<compile_context>
chip_gen: v7x
topology: tpu7x:2x2x1
jax: 0.10.0
libtpu: 0.0.40
codegen_flags: <defaults>
</compile_context>

<pallas_src>
import math
import functools

import jax
import jax.numpy as jnp
from jax.experimental import pallas as pl
from jax.experimental.pallas import tpu as pltpu


def _fast_recip(x):
    # EUP approximate reciprocal + one Newton step: divide-free, ~f32 accuracy.
    r = pl.reciprocal(x, approx=True)
    return r * (2.0 - x * r)


def _largest_divisor(n, cap):
    for t in range(min(n, cap), 0, -1):
        if n % t == 0:
            return t
    return 1


# --------------------------- fully fused MHA kernel ---------------------------

def _mha_fused_kernel(q_ref, k_ref, v_ref, mask_ref, gamma_ref,
                      qw_ref, kw_ref, vw_ref, qb_ref, kb_ref, vb_ref,
                      ow_ref, ob_ref, o_ref, *,
                      n_heads, d_k, d_v, b_tile, zero_pad):
    f32, bf16 = jnp.float32, jnp.bfloat16
    h, bt = n_heads, b_tile
    tq = q_ref.shape[1]            # query rows handled in this grid step
    S = k_ref.shape[1]             # full key/value sequence length
    d_model = q_ref.shape[2]
    bh = bt * h
    neg = f32(-1e32)
    nt = (((1,), (1,)), ((), ()))  # "x @ w.T" for torch-style (out, in) weights

    # ---- fused q/k/v projections: bf16 MXU operands, f32 accumulation -------
    def proj(x_ref, w_ref, b_ref, rows):
        x = x_ref[...].reshape(rows, x_ref.shape[2]).astype(bf16)
        return jax.lax.dot_general(x, w_ref[...], nt,
                                   preferred_element_type=f32) + b_ref[...]

    qh = proj(q_ref, qw_ref, qb_ref, bt * tq) * f32(1.0 / math.sqrt(d_k))
    kh = proj(k_ref, kw_ref, kb_ref, bt * S)
    vh = proj(v_ref, vw_ref, vb_ref, bt * S)

    # ---- head split: (rows, h*d) -> (bt*h, seq, d); heads become a batch dim.
    # TODO(synk): at production d_model (>=128) feed the kernel a pre-split
    # (b, h, S, d_k) layout (or pad d_k to 128) so this lane-slice relayout
    # disappears entirely.
    def split_heads(x, seq, d):
        return jnp.stack([x[b * seq:(b + 1) * seq, i * d:(i + 1) * d]
                          for b in range(bt) for i in range(h)], axis=0)

    q3 = split_heads(qh, tq, d_k).astype(bf16)   # (bh, tq, d_k)
    k3 = split_heads(kh, S, d_k).astype(bf16)    # (bh, S,  d_k)
    v3 = split_heads(vh, S, d_v).astype(bf16)    # (bh, S,  d_v)

    # ---- scores for every (batch row, head) pair: ONE batched MXU matmul ----
    scores = jnp.einsum("bqd,bkd->bqk", q3, k3,
                        preferred_element_type=f32)          # (bh, tq, S)

    m = mask_ref[0, 0]                                       # (tq, S), shared over batch
    is_masked = m == 0.0                                     # computed once, reused twice
    q_off = pl.program_id(1) * tq
    rowq = jax.lax.broadcasted_iota(jnp.int32, (tq, S), 0) + q_off   # global query idx
    colk = jax.lax.broadcasted_iota(jnp.int32, (tq, S), 1)           # global key idx
    pos = jnp.abs(colk - rowq).astype(f32)                   # position effect

    # ---- first (no-grad in torch) masked softmax -----------------------------
    ms = jnp.where(is_masked, neg, scores)
    ms = ms - jnp.max(ms, axis=-1, keepdims=True)
    e1 = jnp.exp(ms)
    p = e1 * _fast_recip(jnp.sum(e1, axis=-1, keepdims=True))
    p = p * m

    # ---- distance-decay term --------------------------------------------------
    # Inclusive cumsum along keys as one upper-triangular ones matmul (MXU).
    # TODO(synk): O(S^3); once KV-tiled this becomes a per-tile matmul plus a
    # carried running suffix-sum (or a log2(S) pltpu.roll prefix scan).
    kr = jax.lax.broadcasted_iota(jnp.int32, (S, S), 0)
    kc = jax.lax.broadcasted_iota(jnp.int32, (S, S), 1)
    tri = (kr <= kc).astype(bf16)
    distcum = jnp.dot(p.reshape(bh * tq, S).astype(bf16), tri,
                      preferred_element_type=f32).reshape(bh, tq, S)
    disttotal = jnp.sum(p, axis=-1, keepdims=True)
    dist = jnp.sqrt(jnp.maximum((disttotal - distcum) * pos, 0.0))

    # Per-head decay; clamp folded into the exp argument (decay <= 1 already, so
    # torch's 1e5 upper clamp never binds).  gamma replication is bt*h scalars.
    gamma = jnp.concatenate([gamma_ref[...]] * bt, axis=0)   # (bh, 1, 1), -softplus(gamma_h)
    total_effect = jnp.exp(jnp.maximum(dist * gamma, f32(math.log(1e-5))))

    # ---- second masked softmax on decay-modulated scores ---------------------
    sc2 = jnp.where(is_masked, neg, scores * total_effect)
    sc2 = sc2 - jnp.max(sc2, axis=-1, keepdims=True)
    e2 = jnp.exp(sc2)
    attn = e2 * _fast_recip(jnp.sum(e2, axis=-1, keepdims=True))
    if zero_pad:
        attn = jnp.where(rowq == 0, 0.0, attn)               # zero global query row 0
    # TODO(synk): dropout treated as identity (inference); training parity needs
    # pltpu.prng_seed / prng_random_bits masking here.

    # ---- context for every (batch row, head) pair: ONE batched MXU matmul ----
    ctx = jnp.einsum("bqk,bkd->bqd", attn.astype(bf16), v3,
                     preferred_element_type=f32)             # (bh, tq, d_v)

    # Heads back to lane-dense (bt*tq, v_len), then fused output projection.
    # (For production, keep d_model/v_len >= 128 so this store is lane-dense.)
    ctx2d = jnp.concatenate(
        [jnp.concatenate([ctx[b * h + i] for i in range(h)], axis=-1)
         for b in range(bt)], axis=0)                        # (bt*tq, v_len)
    out2d = jax.lax.dot_general(ctx2d.astype(bf16), ow_ref[...], nt,
                                preferred_element_type=f32) + ob_ref[...]
    o_ref[...] = out2d.reshape(bt, tq, d_model)


def pallas_mha_fused(q, k, v, mask, gamma_neg, q_w, k_w, v_w, q_b, k_b, v_b,
                     out_w, out_b, *, n_heads, zero_pad, b_tile=None, q_tile=None):
    bs, S, d_model = q.shape
    v_len = v.shape[-1]
    d_k = d_model // n_heads
    d_v = v_len // n_heads
    if b_tile is None:
        b_tile = _largest_divisor(bs, cap=8)   # multiple batch rows per grid step
    if q_tile is None:
        q_tile = S                             # demo: whole sequence per step
    assert bs % b_tile == 0 and S % q_tile == 0
    bf16 = jnp.bfloat16

    kernel = functools.partial(_mha_fused_kernel, n_heads=n_heads, d_k=d_k,
                               d_v=d_v, b_tile=b_tile, zero_pad=zero_pad)
    grid = (bs // b_tile, S // q_tile)
    return pl.pallas_call(
        kernel,
        grid=grid,
        in_specs=[
            pl.BlockSpec((b_tile, q_tile, d_model), lambda b, qi: (b, qi, 0)),  # q (raw)
            pl.BlockSpec((b_tile, S, d_model), lambda b, qi: (b, 0, 0)),        # k (raw)
            pl.BlockSpec((b_tile, S, v_len), lambda b, qi: (b, 0, 0)),          # v (raw)
            # NOTE: mask is shared across batch (index map ignores b); a per-batch
            # mask would need its batch index threaded through this index_map.
            pl.BlockSpec((1, 1, q_tile, S), lambda b, qi: (0, 0, qi, 0)),       # mask
            pl.BlockSpec((n_heads, 1, 1), lambda b, qi: (0, 0, 0)),             # -softplus(gamma)
            pl.BlockSpec((d_model, d_model), lambda b, qi: (0, 0)),             # q_w (bf16)
            pl.BlockSpec((d_model, d_model), lambda b, qi: (0, 0)),             # k_w (bf16)
            pl.BlockSpec((v_len, v_len), lambda b, qi: (0, 0)),                 # v_w (bf16)
            pl.BlockSpec((1, d_model), lambda b, qi: (0, 0)),                   # q_b
            pl.BlockSpec((1, d_model), lambda b, qi: (0, 0)),                   # k_b
            pl.BlockSpec((1, v_len), lambda b, qi: (0, 0)),                     # v_b
            pl.BlockSpec((d_model, v_len), lambda b, qi: (0, 0)),               # out_w (bf16)
            pl.BlockSpec((1, d_model), lambda b, qi: (0, 0)),                   # out_b
        ],
        out_specs=pl.BlockSpec((b_tile, q_tile, d_model), lambda b, qi: (b, qi, 0)),
        out_shape=jax.ShapeDtypeStruct((bs, S, d_model), jnp.float32),
        compiler_params=pltpu.CompilerParams(
            # Both axes independent -> v7x's 2 TensorCores get work even at bs=1.
            dimension_semantics=("parallel", "parallel"),
            # Above the 16/32 MiB scoped defaults, under v7x's 64 MiB physical
            # (inputs double-buffer, so leave headroom).
            vmem_limit_bytes=48 * 1024 * 1024),
    )(q, k, v, mask, gamma_neg,
      q_w.astype(bf16), k_w.astype(bf16), v_w.astype(bf16),
      q_b.reshape(1, -1), k_b.reshape(1, -1), v_b.reshape(1, -1),
      out_w.astype(bf16), out_b.reshape(1, -1))


# ------------------------------ parameter setup -------------------------------

def _xavier_uniform(key, shape, fan_in, fan_out):
    bound = math.sqrt(6.0 / (fan_in + fan_out))
    return jax.random.uniform(key, shape, jnp.float32, -bound, bound)


def init_params(key, d_model, v_len, n_heads, kq_same):
    ks = jax.random.split(key, 5)
    params = {
        "k_w": _xavier_uniform(ks[0], (d_model, d_model), d_model, d_model),
        "k_b": jnp.zeros((d_model,), jnp.float32),
        "v_w": _xavier_uniform(ks[1], (v_len, v_len), v_len, v_len),
        "v_b": jnp.zeros((v_len,), jnp.float32),
        "out_w": _xavier_uniform(ks[2], (d_model, v_len), v_len, d_model),
        "out_b": jnp.zeros((d_model,), jnp.float32),
        "gammas": _xavier_uniform(ks[3], (n_heads, 1, 1), 1, n_heads),
    }
    if not kq_same:
        params["q_w"] = _xavier_uniform(ks[4], (d_model, d_model), d_model, d_model)
        params["q_b"] = jnp.zeros((d_model,), jnp.float32)
    return params


# --------------------------- forward (Pallas path) ----------------------------

def mha_forward(params, q, k, v, mask, zero_pad, *, n_heads, kq_same,
                b_tile=None, q_tile=None):
    q_w = params["k_w"] if kq_same else params["q_w"]
    q_b = params["k_b"] if kq_same else params["q_b"]
    gamma_neg = (-jax.nn.softplus(params["gammas"])).reshape(n_heads, 1, 1)
    return pallas_mha_fused(q, k, v, mask, gamma_neg,
                            q_w, params["k_w"], params["v_w"],
                            q_b, params["k_b"], params["v_b"],
                            params["out_w"], params["out_b"],
                            n_heads=n_heads, zero_pad=zero_pad,
                            b_tile=b_tile, q_tile=q_tile)


# --------------------------- plain-JAX f32 reference --------------------------

def ref_forward(params, q, k, v, mask, zero_pad, *, n_heads, kq_same):
    bs, S, d_model = q.shape
    v_len = v.shape[-1]
    d_k = d_model // n_heads

    def lin(x, w, b):
        return x @ w.T + b

    def split(x):
        return x.reshape(bs, S, n_heads, -1).transpose(0, 2, 1, 3)

    kh = split(lin(k, params["k_w"], params["k_b"]))
    if kq_same:
        qh = split(lin(q, params["k_w"], params["k_b"]))
    else:
        qh = split(lin(q, params["q_w"], params["q_b"]))
    vh = split(lin(v, params["v_w"], params["v_b"]))

    scores = jnp.einsum("bhqd,bhkd->bhqk", qh, kh) / math.sqrt(d_k)
    i_idx = jnp.arange(S)[:, None]
    j_idx = jnp.arange(S)[None, :]
    pos_effect = jnp.abs(j_idx - i_idx).astype(jnp.float32)[None, None]

    neg = jnp.float32(-1e32)
    scores_ = jnp.where(mask == 0, neg, scores)
    scores_ = jax.nn.softmax(scores_, axis=-1) * mask
    distcum = jnp.cumsum(scores_, axis=-1)
    disttotal = jnp.sum(scores_, axis=-1, keepdims=True)
    dist = jnp.sqrt(jnp.maximum((disttotal - distcum) * pos_effect, 0.0))

    gamma = (-jax.nn.softplus(params["gammas"])).reshape(1, n_heads, 1, 1)
    total_effect = jnp.clip(jnp.exp(dist * gamma), 1e-5, 1e5)

    scores = scores * total_effect
    scores = jnp.where(mask == 0, neg, scores)
    scores = jax.nn.softmax(scores, axis=-1)
    if zero_pad:
        scores = scores.at[:, :, 0, :].set(0.0)
    out = jnp.einsum("bhqk,bhkd->bhqd", scores, vh)
    concat = out.transpose(0, 2, 1, 3).reshape(bs, S, v_len)
    return concat @ params["out_w"].T + params["out_b"]


# ------------------------------------ main ------------------------------------

if __name__ == "__main__":
    d_model = 32
    v_len = 32
    n_heads = 4
    bs = 2
    S = 8
    kq_same = False
    zero_pad = True

    key = jax.random.PRNGKey(0)
    kp, kq_, kk_, kv_ = jax.random.split(key, 4)
    params = init_params(kp, d_model, v_len, n_heads, kq_same)

    q = jax.random.normal(kq_, (bs, S, d_model), jnp.float32)
    k = jax.random.normal(kk_, (bs, S, d_model), jnp.float32)
    v = jax.random.normal(kv_, (bs, S, v_len), jnp.float32)
    mask = jnp.tril(jnp.ones((S, S), jnp.float32))[None, None]  # (1,1,S,S)

    out = mha_forward(params, q, k, v, mask, zero_pad,
                      n_heads=n_heads, kq_same=kq_same)
    out = jax.block_until_ready(out)

    ref = ref_forward(params, q, k, v, mask, zero_pad,
                      n_heads=n_heads, kq_same=kq_same)
    assert out.shape == (bs, S, d_model)
    # Tolerance reflects bf16 MXU operands (f32 accumulation) + EUP reciprocal
    # against the pure-f32 reference.
    assert jnp.allclose(out, ref, rtol=2e-2, atol=5e-2), (
        f"max abs diff {jnp.max(jnp.abs(out - ref))}")

    print("KERNEL_OK")
</pallas_src>

<mosaic_0001>
module attributes {stable_mosaic.version = 11 : i64} {
  func.func @_mha_fused_kernel(%arg0: i32, %arg1: i32, %arg2: memref<2x8x32xf32, #tpu.memory_space<vmem>>, %arg3: memref<2x8x32xf32, #tpu.memory_space<vmem>>, %arg4: memref<2x8x32xf32, #tpu.memory_space<vmem>>, %arg5: memref<1x1x8x8xf32, #tpu.memory_space<vmem>>, %arg6: memref<4x1x1xf32, #tpu.memory_space<vmem>>, %arg7: memref<32x32xbf16, #tpu.memory_space<vmem>>, %arg8: memref<32x32xbf16, #tpu.memory_space<vmem>>, %arg9: memref<32x32xbf16, #tpu.memory_space<vmem>>, %arg10: memref<1x32xf32, #tpu.memory_space<vmem>>, %arg11: memref<1x32xf32, #tpu.memory_space<vmem>>, %arg12: memref<1x32xf32, #tpu.memory_space<vmem>>, %arg13: memref<32x32xbf16, #tpu.memory_space<vmem>>, %arg14: memref<1x32xf32, #tpu.memory_space<vmem>>, %arg15: memref<2x8x32xf32, #tpu.memory_space<vmem>>) attributes {dimension_semantics = [#tpu.dimension_semantics<parallel>, #tpu.dimension_semantics<parallel>], iteration_bounds = array<i64: 1, 1>, scalar_prefetch = 0 : i64, scratch_operands = 0 : i64, tpu.core_type = #tpu.core_type<tc>, window_params = [{transform_indices = @transform_0, window_bounds = array<i64: 2, 8, 32>}, {transform_indices = @transform_1, window_bounds = array<i64: 2, 8, 32>}, {transform_indices = @transform_2, window_bounds = array<i64: 2, 8, 32>}, {transform_indices = @transform_3, window_bounds = array<i64: 1, 1, 8, 8>}, {pipeline_mode = #tpu.pipeline_mode<synchronous>, transform_indices = @transform_4, window_bounds = array<i64: 4, 1, 1>}, {pipeline_mode = #tpu.pipeline_mode<synchronous>, transform_indices = @transform_5, window_bounds = array<i64: 32, 32>}, {pipeline_mode = #tpu.pipeline_mode<synchronous>, transform_indices = @transform_6, window_bounds = array<i64: 32, 32>}, {pipeline_mode = #tpu.pipeline_mode<synchronous>, transform_indices = @transform_7, window_bounds = array<i64: 32, 32>}, {pipeline_mode = #tpu.pipeline_mode<synchronous>, transform_indices = @transform_8, window_bounds = array<i64: 1, 32>}, {pipeline_mode = #tpu.pipeline_mode<synchronous>, transform_indices = @transform_9, window_bounds = array<i64: 1, 32>}, {pipeline_mode = #tpu.pipeline_mode<synchronous>, transform_indices = @transform_10, window_bounds = array<i64: 1, 32>}, {pipeline_mode = #tpu.pipeline_mode<synchronous>, transform_indices = @transform_11, window_bounds = array<i64: 32, 32>}, {pipeline_mode = #tpu.pipeline_mode<synchronous>, transform_indices = @transform_12, window_bounds = array<i64: 1, 32>}, {transform_indices = @transform_13, window_bounds = array<i64: 2, 8, 32>}]} {
    %c0 = arith.constant 0 : index
    %c0_0 = arith.constant 0 : index
    %c0_1 = arith.constant 0 : index
    %0 = vector.load %arg2[%c0, %c0_0, %c0_1] : memref<2x8x32xf32, #tpu.memory_space<vmem>>, vector<2x8x32xf32>
    %1 = vector.shape_cast %0 : vector<2x8x32xf32> to vector<16x32xf32>
    %2 = arith.truncf %1 : vector<16x32xf32> to vector<16x32xbf16>
    %c0_2 = arith.constant 0 : index
    %c0_3 = arith.constant 0 : index
    %3 = vector.load %arg7[%c0_2, %c0_3] : memref<32x32xbf16, #tpu.memory_space<vmem>>, vector<32x32xbf16>
    %cst = arith.constant dense<0.000000e+00> : vector<16x32xf32>
    %4 = tpu.matmul %2, %3, %cst {dimension_numbers = #tpu.dot_dimension_numbers<[1], [1], [0], [0], [0, 0, 1, 0], [], []>} : vector<16x32xbf16>, vector<32x32xbf16>, vector<16x32xf32> -> vector<16x32xf32>
    %c0_4 = arith.constant 0 : index
    %c0_5 = arith.constant 0 : index
    %5 = vector.load %arg10[%c0_4, %c0_5] : memref<1x32xf32, #tpu.memory_space<vmem>>, vector<1x32xf32>
    %6 = vector.broadcast %5 : vector<1x32xf32> to vector<16x32xf32>
    %7 = arith.addf %4, %6 : vector<16x32xf32>
    %cst_6 = arith.constant 0.353553385 : f32
    %8 = vector.broadcast %cst_6 : f32 to vector<16x32xf32>
    %9 = arith.mulf %7, %8 : vector<16x32xf32>
    %c0_7 = arith.constant 0 : index
    %c0_8 = arith.constant 0 : index
    %c0_9 = arith.constant 0 : index
    %10 = vector.load %arg3[%c0_7, %c0_8, %c0_9] : memref<2x8x32xf32, #tpu.memory_space<vmem>>, vector<2x8x32xf32>
    %11 = vector.shape_cast %10 : vector<2x8x32xf32> to vector<16x32xf32>
    %12 = arith.truncf %11 : vector<16x32xf32> to vector<16x32xbf16>
    %c0_10 = arith.constant 0 : index
    %c0_11 = arith.constant 0 : index
    %13 = vector.load %arg8[%c0_10, %c0_11] : memref<32x32xbf16, #tpu.memory_space<vmem>>, vector<32x32xbf16>
    %cst_12 = arith.constant dense<0.000000e+00> : vector<16x32xf32>
    %14 = tpu.matmul %12, %13, %cst_12 {dimension_numbers = #tpu.dot_dimension_numbers<[1], [1], [0], [0], [0, 0, 1, 0], [], []>} : vector<16x32xbf16>, vector<32x32xbf16>, vector<16x32xf32> -> vector<16x32xf32>
    %c0_13 = arith.constant 0 : index
    %c0_14 = arith.constant 0 : index
    %15 = vector.load %arg11[%c0_13, %c0_14] : memref<1x32xf32, #tpu.memory_space<vmem>>, vector<1x32xf32>
    %16 = vector.broadcast %15 : vector<1x32xf32> to vector<16x32xf32>
    %17 = arith.addf %14, %16 : vector<16x32xf32>
    %c0_15 = arith.constant 0 : index
    %c0_16 = arith.constant 0 : index
    %c0_17 = arith.constant 0 : index
    %18 = vector.load %arg4[%c0_15, %c0_16, %c0_17] : memref<2x8x32xf32, #tpu.memory_space<vmem>>, vector<2x8x32xf32>
    %19 = vector.shape_cast %18 : vector<2x8x32xf32> to vector<16x32xf32>
    %20 = arith.truncf %19 : vector<16x32xf32> to vector<16x32xbf16>
    %c0_18 = arith.constant 0 : index
    %c0_19 = arith.constant 0 : index
    %21 = vector.load %arg9[%c0_18, %c0_19] : memref<32x32xbf16, #tpu.memory_space<vmem>>, vector<32x32xbf16>
    %cst_20 = arith.constant dense<0.000000e+00> : vector<16x32xf32>
    %22 = tpu.matmul %20, %21, %cst_20 {dimension_numbers = #tpu.dot_dimension_numbers<[1], [1], [0], [0], [0, 0, 1, 0], [], []>} : vector<16x32xbf16>, vector<32x32xbf16>, vector<16x32xf32> -> vector<16x32xf32>
    %c0_21 = arith.constant 0 : index
    %c0_22 = arith.constant 0 : index
    %23 = vector.load %arg12[%c0_21, %c0_22] : memref<1x32xf32, #tpu.memory_space<vmem>>, vector<1x32xf32>
    %24 = vector.broadcast %23 : vector<1x32xf32> to vector<16x32xf32>
    %25 = arith.addf %22, %24 : vector<16x32xf32>
    %26 = vector.extract_strided_slice %9 {offsets = [0, 0], sizes = [8, 8], strides = [1, 1]} : vector<16x32xf32> to vector<8x8xf32>
    %27 = vector.extract_strided_slice %9 {offsets = [0, 8], sizes = [8, 8], strides = [1, 1]} : vector<16x32xf32> to vector<8x8xf32>
    %28 = vector.extract_strided_slice %9 {offsets = [0, 16], sizes = [8, 8], strides = [1, 1]} : vector<16x32xf32> to vector<8x8xf32>
    %29 = vector.extract_strided_slice %9 {offsets = [0, 24], sizes = [8, 8], strides = [1, 1]} : vector<16x32xf32> to vector<8x8xf32>
    %30 = vector.extract_strided_slice %9 {offsets = [8, 0], sizes = [8, 8], strides = [1, 1]} : vector<16x32xf32> to vector<8x8xf32>
    %31 = vector.extract_strided_slice %9 {offsets = [8, 8], sizes = [8, 8], strides = [1, 1]} : vector<16x32xf32> to vector<8x8xf32>
    %32 = vector.extract_strided_slice %9 {offsets = [8, 16], sizes = [8, 8], strides = [1, 1]} : vector<16x32xf32> to vector<8x8xf32>
    %33 = vector.extract_strided_slice %9 {offsets = [8, 24], sizes = [8, 8], strides = [1, 1]} : vector<16x32xf32> to vector<8x8xf32>
    %34 = vector.shape_cast %26 : vector<8x8xf32> to vector<1x8x8xf32>
    %35 = vector.shape_cast %27 : vector<8x8xf32> to vector<1x8x8xf32>
    %36 = vector.shape_cast %28 : vector<8x8xf32> to vector<1x8x8xf32>
    %37 = vector.shape_cast %29 : vector<8x8xf32> to vector<1x8x8xf32>
    %38 = vector.shape_cast %30 : vector<8x8xf32> to vector<1x8x8xf32>
    %39 = vector.shape_cast %31 : vector<8x8xf32> to vector<1x8x8xf32>
    %40 = vector.shape_cast %32 : vector<8x8xf32> to vector<1x8x8xf32>
    %41 = vector.shape_cast %33 : vector<8x8xf32> to vector<1x8x8xf32>
    %42 = tpu.concatenate %34, %35, %36, %37, %38, %39, %40, %41 in 0 : vector<1x8x8xf32>, vector<1x8x8xf32>, vector<1x8x8xf32>, vector<1x8x8xf32>, vector<1x8x8xf32>, vector<1x8x8xf32>, vector<1x8x8xf32>, vector<1x8x8xf32> -> vector<8x8x8xf32>
    %43 = arith.truncf %42 : vector<8x8x8xf32> to vector<8x8x8xbf16>
    %44 = vector.extract_strided_slice %17 {offsets = [0, 0], sizes = [8, 8], strides = [1, 1]} : vector<16x32xf32> to vector<8x8xf32>
    %45 = vector.extract_strided_slice %17 {offsets = [0, 8], sizes = [8, 8], strides = [1, 1]} : vector<16x32xf32> to vector<8x8xf32>
    %46 = vector.extract_strided_slice %17 {offsets = [0, 16], sizes = [8, 8], strides = [1, 1]} : vector<16x32xf32> to vector<8x8xf32>
    %47 = vector.extract_strided_slice %17 {offsets = [0, 24], sizes = [8, 8], strides = [1, 1]} : vector<16x32xf32> to vector<8x8xf32>
    %48 = vector.extract_strided_slice %17 {offsets = [8, 0], sizes = [8, 8], strides = [1, 1]} : vector<16x32xf32> to vector<8x8xf32>
    %49 = vector.extract_strided_slice %17 {offsets = [8, 8], sizes = [8, 8], strides = [1, 1]} : vector<16x32xf32> to vector<8x8xf32>
    %50 = vector.extract_strided_slice %17 {offsets = [8, 16], sizes = [8, 8], strides = [1, 1]} : vector<16x32xf32> to vector<8x8xf32>
    %51 = vector.extract_strided_slice %17 {offsets = [8, 24], sizes = [8, 8], strides = [1, 1]} : vector<16x32xf32> to vector<8x8xf32>
    %52 = vector.shape_cast %44 : vector<8x8xf32> to vector<1x8x8xf32>
    %53 = vector.shape_cast %45 : vector<8x8xf32> to vector<1x8x8xf32>
    %54 = vector.shape_cast %46 : vector<8x8xf32> to vector<1x8x8xf32>
    %55 = vector.shape_cast %47 : vector<8x8xf32> to vector<1x8x8xf32>
    %56 = vector.shape_cast %48 : vector<8x8xf32> to vector<1x8x8xf32>
    %57 = vector.shape_cast %49 : vector<8x8xf32> to vector<1x8x8xf32>
    %58 = vector.shape_cast %50 : vector<8x8xf32> to vector<1x8x8xf32>
    %59 = vector.shape_cast %51 : vector<8x8xf32> to vector<1x8x8xf32>
    %60 = tpu.concatenate %52, %53, %54, %55, %56, %57, %58, %59 in 0 : vector<1x8x8xf32>, vector<1x8x8xf32>, vector<1x8x8xf32>, vector<1x8x8xf32>, vector<1x8x8xf32>, vector<1x8x8xf32>, vector<1x8x8xf32>, vector<1x8x8xf32> -> vector<8x8x8xf32>
    %61 = arith.truncf %60 : vector<8x8x8xf32> to vector<8x8x8xbf16>
    %62 = vector.extract_strided_slice %25 {offsets = [0, 0], sizes = [8, 8], strides = [1, 1]} : vector<16x32xf32> to vector<8x8xf32>
    %63 = vector.extract_strided_slice %25 {offsets = [0, 8], sizes = [8, 8], strides = [1, 1]} : vector<16x32xf32> to vector<8x8xf32>
    %64 = vector.extract_strided_slice %25 {offsets = [0, 16], sizes = [8, 8], strides = [1, 1]} : vector<16x32xf32> to vector<8x8xf32>
    %65 = vector.extract_strided_slice %25 {offsets = [0, 24], sizes = [8, 8], strides = [1, 1]} : vector<16x32xf32> to vector<8x8xf32>
    %66 = vector.extract_strided_slice %25 {offsets = [8, 0], sizes = [8, 8], strides = [1, 1]} : vector<16x32xf32> to vector<8x8xf32>
    %67 = vector.extract_strided_slice %25 {offsets = [8, 8], sizes = [8, 8], strides = [1, 1]} : vector<16x32xf32> to vector<8x8xf32>
    %68 = vector.extract_strided_slice %25 {offsets = [8, 16], sizes = [8, 8], strides = [1, 1]} : vector<16x32xf32> to vector<8x8xf32>
    %69 = vector.extract_strided_slice %25 {offsets = [8, 24], sizes = [8, 8], strides = [1, 1]} : vector<16x32xf32> to vector<8x8xf32>
    %70 = vector.shape_cast %62 : vector<8x8xf32> to vector<1x8x8xf32>
    %71 = vector.shape_cast %63 : vector<8x8xf32> to vector<1x8x8xf32>
    %72 = vector.shape_cast %64 : vector<8x8xf32> to vector<1x8x8xf32>
    %73 = vector.shape_cast %65 : vector<8x8xf32> to vector<1x8x8xf32>
    %74 = vector.shape_cast %66 : vector<8x8xf32> to vector<1x8x8xf32>
    %75 = vector.shape_cast %67 : vector<8x8xf32> to vector<1x8x8xf32>
    %76 = vector.shape_cast %68 : vector<8x8xf32> to vector<1x8x8xf32>
    %77 = vector.shape_cast %69 : vector<8x8xf32> to vector<1x8x8xf32>
    %78 = tpu.concatenate %70, %71, %72, %73, %74, %75, %76, %77 in 0 : vector<1x8x8xf32>, vector<1x8x8xf32>, vector<1x8x8xf32>, vector<1x8x8xf32>, vector<1x8x8xf32>, vector<1x8x8xf32>, vector<1x8x8xf32>, vector<1x8x8xf32> -> vector<8x8x8xf32>
    %79 = arith.truncf %78 : vector<8x8x8xf32> to vector<8x8x8xbf16>
    "tpu.trace_start"() <{level = 10 : i32, message = "bqd,bkd->bqk"}> : () -> ()
    %cst_23 = arith.constant dense<0.000000e+00> : vector<8x8x8xf32>
    %80 = tpu.matmul %43, %61, %cst_23 {dimension_numbers = #tpu.dot_dimension_numbers<[2], [2], [1], [1], [0, 0, 0, 1, 1, 1], [0], [0]>} : vector<8x8x8xbf16>, vector<8x8x8xbf16>, vector<8x8x8xf32> -> vector<8x8x8xf32>
    "tpu.trace_stop"() : () -> ()
    %c0_24 = arith.constant 0 : index
    %c0_25 = arith.constant 0 : index
    %c0_26 = arith.constant 0 : index
    %c0_27 = arith.constant 0 : index
    %81 = vector.load %arg5[%c0_24, %c0_25, %c0_26, %c0_27] : memref<1x1x8x8xf32, #tpu.memory_space<vmem>>, vector<1x1x8x8xf32>
    %82 = vector.shape_cast %81 : vector<1x1x8x8xf32> to vector<8x8xf32>
    %cst_28 = arith.constant 0.000000e+00 : f32
    %83 = vector.broadcast %cst_28 : f32 to vector<8x8xf32>
    %84 = arith.cmpf oeq, %82, %83 : vector<8x8xf32>
    %c8_i32 = arith.constant 8 : i32
    %85 = arith.muli %arg1, %c8_i32 : i32
    %86 = tpu.iota {dimensions = array<i32: 0>} : vector<8x8xi32>
    %87 = vector.broadcast %85 : i32 to vector<8x8xi32>
    %88 = arith.addi %86, %87 : vector<8x8xi32>
    %89 = tpu.iota {dimensions = array<i32: 1>} : vector<8x8xi32>
    %90 = arith.subi %89, %88 : vector<8x8xi32>
    %91 = math.absi %90 : vector<8x8xi32>
    %92 = arith.sitofp %91 : vector<8x8xi32> to vector<8x8xf32>
    %cst_29 = arith.constant -1.000000e+32 : f32
    %93 = vector.shape_cast %84 : vector<8x8xi1> to vector<1x8x8xi1>
    %94 = vector.broadcast %93 : vector<1x8x8xi1> to vector<8x8x8xi1>
    %95 = vector.broadcast %cst_29 : f32 to vector<8x8x8xf32>
    %96 = arith.select %94, %95, %80 : vector<8x8x8xi1>, vector<8x8x8xf32>
    %cst_30 = arith.constant dense<0xFF800000> : vector<8x8xf32>
    %97 = vector.multi_reduction <maximumf>, %96, %cst_30 [2] : vector<8x8x8xf32> to vector<8x8xf32>
    %98 = vector.shape_cast %97 : vector<8x8xf32> to vector<8x8x1xf32>
    %99 = vector.broadcast %98 : vector<8x8x1xf32> to vector<8x8x8xf32>
    %100 = arith.subf %96, %99 : vector<8x8x8xf32>
    %101 = math.exp %100 : vector<8x8x8xf32>
    %cst_31 = arith.constant dense<0.000000e+00> : vector<8x8xf32>
    %102 = vector.multi_reduction <add>, %101, %cst_31 [2] : vector<8x8x8xf32> to vector<8x8xf32>
    %103 = vector.shape_cast %102 : vector<8x8xf32> to vector<8x8x1xf32>
    %104 = tpu.reciprocal %103 {approx = true} : vector<8x8x1xf32> -> vector<8x8x1xf32>
    %105 = arith.mulf %103, %104 : vector<8x8x1xf32>
    %cst_32 = arith.constant 2.000000e+00 : f32
    %106 = vector.broadcast %cst_32 : f32 to vector<8x8x1xf32>
    %107 = arith.subf %106, %105 : vector<8x8x1xf32>
    %108 = arith.mulf %104, %107 : vector<8x8x1xf32>
    %109 = vector.broadcast %108 : vector<8x8x1xf32> to vector<8x8x8xf32>
    %110 = arith.mulf %101, %109 : vector<8x8x8xf32>
    %111 = vector.shape_cast %82 : vector<8x8xf32> to vector<1x8x8xf32>
    %112 = vector.broadcast %111 : vector<1x8x8xf32> to vector<8x8x8xf32>
    %113 = arith.mulf %110, %112 : vector<8x8x8xf32>
    %114 = tpu.iota {dimensions = array<i32: 0>} : vector<8x8xi32>
    %115 = tpu.iota {dimensions = array<i32: 1>} : vector<8x8xi32>
    %116 = arith.cmpi sle, %114, %115 : vector<8x8xi32>
    %117 = arith.extui %116 : vector<8x8xi1> to vector<8x8xi32>
    %118 = arith.sitofp %117 : vector<8x8xi32> to vector<8x8xf32>
    %119 = arith.truncf %118 : vector<8x8xf32> to vector<8x8xbf16>
    %120 = vector.shape_cast %113 : vector<8x8x8xf32> to vector<64x8xf32>
    %121 = arith.truncf %120 : vector<64x8xf32> to vector<64x8xbf16>
    %cst_33 = arith.constant dense<0.000000e+00> : vector<64x8xf32>
    %122 = tpu.matmul %121, %119, %cst_33 {dimension_numbers = #tpu.dot_dimension_numbers<[1], [0], [0], [1], [0, 0, 1, 1], [], []>} : vector<64x8xbf16>, vector<8x8xbf16>, vector<64x8xf32> -> vector<64x8xf32>
    %123 = vector.shape_cast %122 : vector<64x8xf32> to vector<8x8x8xf32>
    %cst_34 = arith.constant dense<0.000000e+00> : vector<8x8xf32>
    %124 = vector.multi_reduction <add>, %113, %cst_34 [2] : vector<8x8x8xf32> to vector<8x8xf32>
    %125 = vector.shape_cast %124 : vector<8x8xf32> to vector<8x8x1xf32>
    %126 = vector.broadcast %125 : vector<8x8x1xf32> to vector<8x8x8xf32>
    %127 = arith.subf %126, %123 : vector<8x8x8xf32>
    %128 = vector.shape_cast %92 : vector<8x8xf32> to vector<1x8x8xf32>
    %129 = vector.broadcast %128 : vector<1x8x8xf32> to vector<8x8x8xf32>
    %130 = arith.mulf %127, %129 : vector<8x8x8xf32>
    %cst_35 = arith.constant 0.000000e+00 : f32
    %131 = vector.broadcast %cst_35 : f32 to vector<8x8x8xf32>
    %132 = arith.maximumf %130, %131 : vector<8x8x8xf32>
    %133 = math.sqrt %132 : vector<8x8x8xf32>
    %c0_36 = arith.constant 0 : index
    %c0_37 = arith.constant 0 : index
    %c0_38 = arith.constant 0 : index
    %134 = vector.load %arg6[%c0_36, %c0_37, %c0_38] : memref<4x1x1xf32, #tpu.memory_space<vmem>>, vector<4x1x1xf32>
    %135 = tpu.concatenate %134, %134 in 0 : vector<4x1x1xf32>, vector<4x1x1xf32> -> vector<8x1x1xf32>
    %136 = vector.broadcast %135 : vector<8x1x1xf32> to vector<8x8x8xf32>
    %137 = arith.mulf %133, %136 : vector<8x8x8xf32>
    %cst_39 = arith.constant -11.5129251 : f32
    %138 = vector.broadcast %cst_39 : f32 to vector<8x8x8xf32>
    %139 = arith.maximumf %137, %138 : vector<8x8x8xf32>
    %140 = math.exp %139 : vector<8x8x8xf32>
    %141 = arith.mulf %80, %140 : vector<8x8x8xf32>
    %cst_40 = arith.constant -1.000000e+32 : f32
    %142 = vector.shape_cast %84 : vector<8x8xi1> to vector<1x8x8xi1>
    %143 = vector.broadcast %142 : vector<1x8x8xi1> to vector<8x8x8xi1>
    %144 = vector.broadcast %cst_40 : f32 to vector<8x8x8xf32>
    %145 = arith.select %143, %144, %141 : vector<8x8x8xi1>, vector<8x8x8xf32>
    %cst_41 = arith.constant dense<0xFF800000> : vector<8x8xf32>
    %146 = vector.multi_reduction <maximumf>, %145, %cst_41 [2] : vector<8x8x8xf32> to vector<8x8xf32>
    %147 = vector.shape_cast %146 : vector<8x8xf32> to vector<8x8x1xf32>
    %148 = vector.broadcast %147 : vector<8x8x1xf32> to vector<8x8x8xf32>
    %149 = arith.subf %145, %148 : vector<8x8x8xf32>
    %150 = math.exp %149 : vector<8x8x8xf32>
    %cst_42 = arith.constant dense<0.000000e+00> : vector<8x8xf32>
    %151 = vector.multi_reduction <add>, %150, %cst_42 [2] : vector<8x8x8xf32> to vector<8x8xf32>
    %152 = vector.shape_cast %151 : vector<8x8xf32> to vector<8x8x1xf32>
    %153 = tpu.reciprocal %152 {approx = true} : vector<8x8x1xf32> -> vector<8x8x1xf32>
    %154 = arith.mulf %152, %153 : vector<8x8x1xf32>
    %cst_43 = arith.constant 2.000000e+00 : f32
    %155 = vector.broadcast %cst_43 : f32 to vector<8x8x1xf32>
    %156 = arith.subf %155, %154 : vector<8x8x1xf32>
    %157 = arith.mulf %153, %156 : vector<8x8x1xf32>
    %158 = vector.broadcast %157 : vector<8x8x1xf32> to vector<8x8x8xf32>
    %159 = arith.mulf %150, %158 : vector<8x8x8xf32>
    %c0_i32 = arith.constant 0 : i32
    %160 = vector.broadcast %c0_i32 : i32 to vector<8x8xi32>
    %161 = arith.cmpi eq, %88, %160 : vector<8x8xi32>
    %cst_44 = arith.constant 0.000000e+00 : f32
    %162 = vector.shape_cast %161 : vector<8x8xi1> to vector<1x8x8xi1>
    %163 = vector.broadcast %162 : vector<1x8x8xi1> to vector<8x8x8xi1>
    %164 = vector.broadcast %cst_44 : f32 to vector<8x8x8xf32>
    %165 = arith.select %163, %164, %159 : vector<8x8x8xi1>, vector<8x8x8xf32>
    %166 = arith.truncf %165 : vector<8x8x8xf32> to vector<8x8x8xbf16>
    "tpu.trace_start"() <{level = 10 : i32, message = "bqk,bkd->bqd"}> : () -> ()
    %cst_45 = arith.constant dense<0.000000e+00> : vector<8x8x8xf32>
    %167 = tpu.matmul %166, %79, %cst_45 {dimension_numbers = #tpu.dot_dimension_numbers<[2], [1], [1], [2], [0, 0, 0, 1, 1, 2], [0], [0]>} : vector<8x8x8xbf16>, vector<8x8x8xbf16>, vector<8x8x8xf32> -> vector<8x8x8xf32>
    "tpu.trace_stop"() : () -> ()
    %168 = vector.extract_strided_slice %167 {offsets = [0, 0, 0], sizes = [1, 8, 8], strides = [1, 1, 1]} : vector<8x8x8xf32> to vector<1x8x8xf32>
    %169 = vector.shape_cast %168 : vector<1x8x8xf32> to vector<8x8xf32>
    %170 = vector.extract_strided_slice %167 {offsets = [1, 0, 0], sizes = [1, 8, 8], strides = [1, 1, 1]} : vector<8x8x8xf32> to vector<1x8x8xf32>
    %171 = vector.shape_cast %170 : vector<1x8x8xf32> to vector<8x8xf32>
    %172 = vector.extract_strided_slice %167 {offsets = [2, 0, 0], sizes = [1, 8, 8], strides = [1, 1, 1]} : vector<8x8x8xf32> to vector<1x8x8xf32>
    %173 = vector.shape_cast %172 : vector<1x8x8xf32> to vector<8x8xf32>
    %174 = vector.extract_strided_slice %167 {offsets = [3, 0, 0], sizes = [1, 8, 8], strides = [1, 1, 1]} : vector<8x8x8xf32> to vector<1x8x8xf32>
    %175 = vector.shape_cast %174 : vector<1x8x8xf32> to vector<8x8xf32>
    %176 = tpu.concatenate %169, %171, %173, %175 in 1 : vector<8x8xf32>, vector<8x8xf32>, vector<8x8xf32>, vector<8x8xf32> -> vector<8x32xf32>
    %177 = vector.extract_strided_slice %167 {offsets = [4, 0, 0], sizes = [1, 8, 8], strides = [1, 1, 1]} : vector<8x8x8xf32> to vector<1x8x8xf32>
    %178 = vector.shape_cast %177 : vector<1x8x8xf32> to vector<8x8xf32>
    %179 = vector.extract_strided_slice %167 {offsets = [5, 0, 0], sizes = [1, 8, 8], strides = [1, 1, 1]} : vector<8x8x8xf32> to vector<1x8x8xf32>
    %180 = vector.shape_cast %179 : vector<1x8x8xf32> to vector<8x8xf32>
    %181 = vector.extract_strided_slice %167 {offsets = [6, 0, 0], sizes = [1, 8, 8], strides = [1, 1, 1]} : vector<8x8x8xf32> to vector<1x8x8xf32>
    %182 = vector.shape_cast %181 : vector<1x8x8xf32> to vector<8x8xf32>
    %183 = vector.extract_strided_slice %167 {offsets = [7, 0, 0], sizes = [1, 8, 8], strides = [1, 1, 1]} : vector<8x8x8xf32> to vector<1x8x8xf32>
    %184 = vector.shape_cast %183 : vector<1x8x8xf32> to vector<8x8xf32>
    %185 = tpu.concatenate %178, %180, %182, %184 in 1 : vector<8x8xf32>, vector<8x8xf32>, vector<8x8xf32>, vector<8x8xf32> -> vector<8x32xf32>
    %186 = tpu.concatenate %176, %185 in 0 : vector<8x32xf32>, vector<8x32xf32> -> vector<16x32xf32>
    %187 = arith.truncf %186 : vector<16x32xf32> to vector<16x32xbf16>
    %c0_46 = arith.constant 0 : index
    %c0_47 = arith.constant 0 : index
    %188 = vector.load %arg13[%c0_46, %c0_47] : memref<32x32xbf16, #tpu.memory_space<vmem>>, vector<32x32xbf16>
    %cst_48 = arith.constant dense<0.000000e+00> : vector<16x32xf32>
    %189 = tpu.matmul %187, %188, %cst_48 {dimension_numbers = #tpu.dot_dimension_numbers<[1], [1], [0], [0], [0, 0, 1, 0], [], []>} : vector<16x32xbf16>, vector<32x32xbf16>, vector<16x32xf32> -> vector<16x32xf32>
    %c0_49 = arith.constant 0 : index
    %c0_50 = arith.constant 0 : index
    %190 = vector.load %arg14[%c0_49, %c0_50] : memref<1x32xf32, #tpu.memory_space<vmem>>, vector<1x32xf32>
    %191 = vector.broadcast %190 : vector<1x32xf32> to vector<16x32xf32>
    %192 = arith.addf %189, %191 : vector<16x32xf32>
    %193 = vector.shape_cast %192 : vector<16x32xf32> to vector<2x8x32xf32>
    %c0_51 = arith.constant 0 : index
    %c0_52 = arith.constant 0 : index
    %c0_53 = arith.constant 0 : index
    %194 = vector.load %arg15[%c0_51, %c0_52, %c0_53] : memref<2x8x32xf32, #tpu.memory_space<vmem>>, vector<2x8x32xf32>
    tpu.vector_store %arg15[%c0_51, %c0_52, %c0_53], %193 {strides = array<i32>} : memref<2x8x32xf32, #tpu.memory_space<vmem>>, vector<2x8x32xf32>,
    return
  }
  func.func @transform_0(%arg0: i32, %arg1: i32) -> (i32, i32, i32) {
    %c0_i32 = arith.constant 0 : i32
    %c0_i32_0 = arith.constant 0 : i32
    return %arg0, %arg1, %c0_i32 : i32, i32, i32
  }
  func.func @transform_1(%arg0: i32, %arg1: i32) -> (i32, i32, i32) {
    %c0_i32 = arith.constant 0 : i32
    %c0_i32_0 = arith.constant 0 : i32
    %c0_i32_1 = arith.constant 0 : i32
    return %arg0, %c0_i32, %c0_i32_0 : i32, i32, i32
  }
  func.func @transform_2(%arg0: i32, %arg1: i32) -> (i32, i32, i32) {
    %c0_i32 = arith.constant 0 : i32
    %c0_i32_0 = arith.constant 0 : i32
    %c0_i32_1 = arith.constant 0 : i32
    return %arg0, %c0_i32, %c0_i32_0 : i32, i32, i32
  }
  func.func @transform_3(%arg0: i32, %arg1: i32) -> (i32, i32, i32, i32) {
    %c0_i32 = arith.constant 0 : i32
    %c0_i32_0 = arith.constant 0 : i32
    %c0_i32_1 = arith.constant 0 : i32
    %c0_i32_2 = arith.constant 0 : i32
    return %c0_i32, %c0_i32_0, %arg1, %c0_i32_1 : i32, i32, i32, i32
  }
  func.func @transform_4(%arg0: i32, %arg1: i32) -> (i32, i32, i32) {
    %c0_i32 = arith.constant 0 : i32
    %c0_i32_0 = arith.constant 0 : i32
    %c0_i32_1 = arith.constant 0 : i32
    %c0_i32_2 = arith.constant 0 : i32
    return %c0_i32, %c0_i32_0, %c0_i32_1 : i32, i32, i32
  }
  func.func @transform_5(%arg0: i32, %arg1: i32) -> (i32, i32) {
    %c0_i32 = arith.constant 0 : i32
    %c0_i32_0 = arith.constant 0 : i32
    %c0_i32_1 = arith.constant 0 : i32
    return %c0_i32, %c0_i32_0 : i32, i32
  }
  func.func @transform_6(%arg0: i32, %arg1: i32) -> (i32, i32) {
    %c0_i32 = arith.constant 0 : i32
    %c0_i32_0 = arith.constant 0 : i32
    %c0_i32_1 = arith.constant 0 : i32
    return %c0_i32, %c0_i32_0 : i32, i32
  }
  func.func @transform_7(%arg0: i32, %arg1: i32) -> (i32, i32) {
    %c0_i32 = arith.constant 0 : i32
    %c0_i32_0 = arith.constant 0 : i32
    %c0_i32_1 = arith.constant 0 : i32
    return %c0_i32, %c0_i32_0 : i32, i32
  }
  func.func @transform_8(%arg0: i32, %arg1: i32) -> (i32, i32) {
    %c0_i32 = arith.constant 0 : i32
    %c0_i32_0 = arith.constant 0 : i32
    %c0_i32_1 = arith.constant 0 : i32
    return %c0_i32, %c0_i32_0 : i32, i32
  }
  func.func @transform_9(%arg0: i32, %arg1: i32) -> (i32, i32) {
    %c0_i32 = arith.constant 0 : i32
    %c0_i32_0 = arith.constant 0 : i32
    %c0_i32_1 = arith.constant 0 : i32
    return %c0_i32, %c0_i32_0 : i32, i32
  }
  func.func @transform_10(%arg0: i32, %arg1: i32) -> (i32, i32) {
    %c0_i32 = arith.constant 0 : i32
    %c0_i32_0 = arith.constant 0 : i32
    %c0_i32_1 = arith.constant 0 : i32
    return %c0_i32, %c0_i32_0 : i32, i32
  }
  func.func @transform_11(%arg0: i32, %arg1: i32) -> (i32, i32) {
    %c0_i32 = arith.constant 0 : i32
    %c0_i32_0 = arith.constant 0 : i32
    %c0_i32_1 = arith.constant 0 : i32
    return %c0_i32, %c0_i32_0 : i32, i32
  }
  func.func @transform_12(%arg0: i32, %arg1: i32) -> (i32, i32) {
    %c0_i32 = arith.constant 0 : i32
    %c0_i32_0 = arith.constant 0 : i32
    %c0_i32_1 = arith.constant 0 : i32
    return %c0_i32, %c0_i32_0 : i32, i32
  }
  func.func @transform_13(%arg0: i32, %arg1: i32) -> (i32, i32, i32) {
    %c0_i32 = arith.constant 0 : i32
    %c0_i32_0 = arith.constant 0 : i32
    return %arg0, %arg1, %c0_i32 : i32, i32, i32
  }
}

</mosaic_0001>

<bundles_post_ra>
// kernel: tpu_custom_call.1
= control target key start
LH: loop header
LB: loop body
LE: loop exit
PB: predicated region body
PF: predicated region fallthrough
CT: control target
= control target key end

     0   :  { %18 = vsyncpa [#allocation3], 0  ;;  %s3017_s0 = inlined_call_operand.hbm [shape: f32[2,8,32], index: 0, kind: input, shape index: {}]   ;;  %s3018_s1 = inlined_call_operand.hbm [shape: f32[2,8,32], index: 1, kind: input, shape index: {}]   ;;  %s3019_s2 = inlined_call_operand.hbm [shape: f32[2,8,32], index: 2, kind: input, shape index: {}]   ;;  %s3020_s3 = inlined_call_operand.hbm [shape: f32[1,1,8,8], index: 3, kind: input, shape index: {}]   ;;  %s3021_s4 = inlined_call_operand.vmem [shape: f32[4,1,1], index: 4, kind: input, shape index: {}]   ;;  %s3022_s5 = inlined_call_operand.vmem [shape: bf16[32,32], index: 5, kind: input, shape index: {}]   ;;  %s3023_s6 = inlined_call_operand.hbm [shape: bf16[32,32], index: 6, kind: input, shape index: {}]   ;;  %s3024_s7 = inlined_call_operand.hbm [shape: bf16[32,32], index: 7, kind: input, shape index: {}]   ;;  %s3025_s8 = inlined_call_operand.vmem [shape: f32[1,32], index: 8, kind: input, shape index: {}]   ;;  %s3026_s9 = inlined_call_operand.vmem [shape: f32[1,32], index: 9, kind: input, shape index: {}]   ;;  %s3027_s10 = inlined_call_operand.vmem [shape: f32[1,32], index: 10, kind: input, shape index: {}]   ;;  %s3028_s11 = inlined_call_operand.vmem [shape: bf16[32,32], index: 11, kind: input, shape index: {}]   ;;  %s3029_s12 = inlined_call_operand.vmem [shape: f32[1,32], index: 12, kind: input, shape index: {}]   ;;  %s3030_s13 = inlined_call_operand.hbm [shape: f32[2,8,32], index: 13, kind: output, shape index: {}]  }
   0x1   :  { %19 = vsyncpa [#allocation6], 0 }
   0x2   :  { %20 = vsyncpa [#allocation9], 0 }
   0x3   :  { %21 = vsyncpa [#allocation12], 0 }
   0x4   :  { %22 = vsyncpa [#allocation4], 0  ;;  %s2388_s25 = smov [#allocation5]   ;;  %s2389_s27 = smov [#allocation8]  }
   0x5   :  { %s40_s26 = sshll.u32 %s2388_s25, 4  ;;  %s65_s28 = sshll.u32 %s2389_s27, 4  ;;  %s41_s26 = int_to_ptr.vmem [resolvable:$true] %s40_s26  ;;  %s66_s28 = int_to_ptr.vmem [resolvable:$true] %s65_s28 }
   0x6   :  { %s2224_s14 = scalar_lea.hbm %s3018_s1, 256 }
   0x7   :  { %p2225_p0 = scmp.ne.s32.totalorder %s3018_s1, %s2224_s14  ;;  %p2228_p1 = scmp.lt.u32.totalorder %s2224_s14, %s3018_s1 }
   0x9   :  { %p2230_p2 = pnand %p2228_p1, %p2225_p0 }
   0xb   :  { %2233 = shalt.err (!%p2230_p2)
}
   0xc   :  { %s2234_s19 = scalar_lea.vmem %s41_s26, 256  ;;  %p2239_p4 = scmp.lt.s32.totalorder %s41_s26, %s41_s26 }
   0xd   :  { %p2235_p3 = scmp.ne.s32.totalorder %s41_s26, %s2234_s19  ;;  %p2240_p5 = scmp.lt.s32.totalorder %s2234_s19, %s2234_s19 }
   0xf   :  { %p2241_p6 = por %p2240_p5, %p2239_p4 }
  0x11   :  { %p2242_p7 = pnand %p2241_p6, %p2235_p3 }
  0x13   :  { %2245 = shalt.err (!%p2242_p7)
}
  0x14   :  { %s2390_s20 = smov 128   ;;  %s2391_s21 = smov 8  }
  0x15   :  { %46 = dma.hbm_to_vmem [thread:$0]  %s3018_s1, 256, %s41_s26, [#allocation6], %s2390_s20, %s2390_s20, %s2391_s21  }
  0x16   :  { %s2246_s27 = scalar_lea.hbm %s3020_s3, 128 }
  0x17   :  { %p2247_p8 = scmp.ne.s32.totalorder %s3020_s3, %s2246_s27  ;;  %p2250_p9 = scmp.lt.u32.totalorder %s2246_s27, %s3020_s3 }
  0x19   :  { %p2252_p10 = pnand %p2250_p9, %p2247_p8 }
  0x1b   :  { %2255 = shalt.err (!%p2252_p10)
}
  0x1c   :  { %s2256_s16 = scalar_lea.vmem %s66_s28, 128  ;;  %p2261_p12 = scmp.lt.s32.totalorder %s66_s28, %s66_s28 }
  0x1d   :  { %p2257_p11 = scmp.ne.s32.totalorder %s66_s28, %s2256_s16  ;;  %p2262_p13 = scmp.lt.s32.totalorder %s2256_s16, %s2256_s16 }
  0x1f   :  { %p2263_p0 = por %p2262_p13, %p2261_p12 }
  0x21   :  { %p2264_p1 = pnand %p2263_p0, %p2257_p11 }
  0x23   :  { %2267 = shalt.err (!%p2264_p1)
}
  0x24   :  { %68 = dma.hbm_to_vmem [thread:$0]  %s3020_s3, 128, %s66_s28, [#allocation9]  }
  0x25   :  { %s2392_s17 = smov [#allocation2]   ;;  %s2393_s19 = smov [#allocation7]  }
  0x26   :  { %s28_s18 = sshll.u32 %s2392_s17, 4  ;;  %s52_s22 = sshll.u32 %s2393_s19, 4  ;;  %s29_s18 = int_to_ptr.vmem [resolvable:$true] %s28_s18  ;;  %s2504_s22 = int_to_ptr.vmem [resolvable:$true] %s52_s22 }
  0x27   :  { %s2268_s25 = scalar_lea.hbm %s3017_s0, 256 }
  0x28   :  { %p2269_p2 = scmp.ne.s32.totalorder %s3017_s0, %s2268_s25  ;;  %p2272_p3 = scmp.lt.u32.totalorder %s2268_s25, %s3017_s0 }
  0x2a   :  { %p2274_p4 = pnand %p2272_p3, %p2269_p2 }
  0x2c   :  { %2277 = shalt.err (!%p2274_p4)
}
  0x2d   :  { %s2278_s3 = scalar_lea.vmem %s29_s18, 256  ;;  %p2283_p6 = scmp.lt.s32.totalorder %s29_s18, %s29_s18 }
  0x2e   :  { %p2279_p5 = scmp.ne.s32.totalorder %s29_s18, %s2278_s3  ;;  %p2284_p7 = scmp.lt.s32.totalorder %s2278_s3, %s2278_s3 }
  0x30   :  { %p2285_p8 = por %p2284_p7, %p2283_p6 }
  0x32   :  { %p2286_p9 = pnand %p2285_p8, %p2279_p5 }
  0x34   :  { %2289 = shalt.err (!%p2286_p9)
}
  0x35   :  { %34 = dma.hbm_to_vmem [thread:$0]  %s3017_s0, 256, %s29_s18, [#allocation3], %s2390_s20, %s2390_s20, %s2391_s21  }
  0x36   :  { %s2290_s26 = scalar_lea.hbm %s3019_s2, 256 }
  0x37   :  { %p2291_p10 = scmp.ne.s32.totalorder %s3019_s2, %s2290_s26  ;;  %p2294_p11 = scmp.lt.u32.totalorder %s2290_s26, %s3019_s2 }
  0x39   :  { %p2296_p12 = pnand %p2294_p11, %p2291_p10 }
  0x3b   :  { %2299 = shalt.err (!%p2296_p12)
}
  0x3c   :  { %s2300_s25 = scalar_lea.vmem %s2504_s22, 256  ;;  %p2305_p0 = scmp.lt.s32.totalorder %s2504_s22, %s2504_s22 }
  0x3d   :  { %p2301_p13 = scmp.ne.s32.totalorder %s2504_s22, %s2300_s25  ;;  %p2306_p1 = scmp.lt.s32.totalorder %s2300_s25, %s2300_s25 }
  0x3f   :  { %p2307_p2 = por %p2306_p1, %p2305_p0 }
  0x41   :  { %p2308_p3 = pnand %p2307_p2, %p2301_p13 }
  0x43   :  { %2311 = shalt.err (!%p2308_p3)
}
  0x44   :  { %58 = dma.hbm_to_vmem [thread:$0]  %s3019_s2, 256, %s2504_s22, [#allocation6], %s2390_s20, %s2390_s20, %s2391_s21  }
  0x45   :  { %s2394_s27 = smov [#allocation10]   ;;  %s2312_s3 = scalar_lea.hbm %s3023_s6, 256 }
  0x46   :  { %s78_s29 = sshll.u32 %s2394_s27, 4  ;;  %p2313_p4 = scmp.ne.s32.totalorder %s3023_s6, %s2312_s3  ;;  %s79_s29 = int_to_ptr.vmem [resolvable:$true] %s78_s29 }
  0x47   :  { %p2316_p5 = scmp.lt.u32.totalorder %s2312_s3, %s3023_s6 }
  0x49   :  { %p2318_p6 = pnand %p2316_p5, %p2313_p4 }
  0x4b   :  { %2321 = shalt.err (!%p2318_p6)
}
  0x4c   :  { %s2322_s26 = scalar_lea.vmem %s79_s29, 256  ;;  %p2327_p8 = scmp.lt.s32.totalorder %s79_s29, %s79_s29 }
  0x4d   :  { %p2323_p7 = scmp.ne.s32.totalorder %s79_s29, %s2322_s26  ;;  %p2328_p9 = scmp.lt.s32.totalorder %s2322_s26, %s2322_s26 }
  0x4f   :  { %p2329_p10 = por %p2328_p9, %p2327_p8 }
  0x51   :  { %p2330_p11 = pnand %p2329_p10, %p2323_p7 }
  0x53   :  { %2333 = shalt.err (!%p2330_p11)
}
  0x54   :  { %s2395_s2 = smov 64   ;;  %s2396_s22 = smov 4  }
  0x55   :  { %84 = dma.hbm_to_vmem [thread:$0]  %s3023_s6, 256, %s79_s29, [#allocation9], %s2395_s2, %s2395_s2, %s2396_s22  }
  0x56   :  { %s2397_s23 = smov [#allocation11]   ;;  %s2334_s18 = scalar_lea.hbm %s3024_s7, 256 }
  0x57   :  { %s90_s24 = sshll.u32 %s2397_s23, 4  ;;  %p2335_p12 = scmp.ne.s32.totalorder %s3024_s7, %s2334_s18  ;;  %s91_s24 = int_to_ptr.vmem [resolvable:$true] %s90_s24 }
  0x58   :  { %p2338_p13 = scmp.lt.u32.totalorder %s2334_s18, %s3024_s7 }
  0x5a   :  { %p2340_p0 = pnand %p2338_p13, %p2335_p12 }
  0x5c   :  { %2343 = shalt.err (!%p2340_p0)
}
  0x5d   :  { %s2344_s28 = scalar_lea.vmem %s91_s24, 256  ;;  %p2349_p2 = scmp.lt.s32.totalorder %s91_s24, %s91_s24 }
  0x5e   :  { %p2345_p1 = scmp.ne.s32.totalorder %s91_s24, %s2344_s28  ;;  %p2350_p3 = scmp.lt.s32.totalorder %s2344_s28, %s2344_s28 }
  0x60   :  { %p2351_p4 = por %p2350_p3, %p2349_p2 }
  0x62   :  { %p2352_p5 = pnand %p2351_p4, %p2345_p1 }
  0x64   :  { %2355 = shalt.err (!%p2352_p5)
}
  0x65   :  { %96 = dma.hbm_to_vmem [thread:$0]  %s3024_s7, 256, %s91_s24, [#allocation12], %s2395_s2, %s2395_s2, %s2396_s22  }
  0x66   :  { %2378 = dma.done.wait [#allocation3], 256  }
  0x67   :  { %2379 = vsyncadd [#allocation3], 4294967040 }
  0x68   :  { %2380 = dma.done.wait [#allocation6], 512  }
  0x69   :  { %2381 = vsyncadd [#allocation6], 4294966784 }
  0x6a   :  { %2382 = dma.done.wait [#allocation9], 384  }
  0x6b   :  { %2383 = vsyncadd [#allocation9], 4294966912 }
  0x6c   :  { %2384 = dma.done.wait [#allocation12], 256  }
  0x6d   :  { %2385 = vsyncadd [#allocation12], 4294967040  ;;  %v2398_v0 = vmov 0.0   ;;  %vm2399_vm0 = vmmov 0   ;;  %vm150_vm1 = vcmask 261120   ;;  %v2120_v1 = vld [vmem:[#allocation10] sm:$0xff]  }
  0x6e   :  { %1953 = vmatprep.subr.bf16.mxu1 %v2398_v0  ;;  %1945 = vmatprep.subr.bf16.mxu0 %v2398_v0  ;;  %v2121_v2 = vld [vmem:[%s3022_s5] sm:$0xff]   ;;  %v231_v3 = vsel %vm150_vm1, %v2120_v1, 0  ;;  %v2123_v6 = vld [vmem:[%s3022_s5 + $0x8] sm:$0xff]   ;;  %v203_v9 = vld [vmem:[#allocation5] sm:$0xff]  ;;  %vm435_vm2 = vcmask 64512   ;;  %s2400_s17 = smov 112  }
  0x6f   :  { %1957 = vmatprep.mubr.msk.bf16.mxu1 %vm2399_vm0, %v2398_v0  ;;  %1949 = vmatprep.mubr.msk.bf16.mxu0 %vm2399_vm0, %v2398_v0  ;;  %v155_v4 = vsel %vm150_vm1, %v2121_v2, 0  ;;  %v2122_v5 = vld [vmem:[#allocation10 + $0x8] sm:$0xff]   ;;  %v158_v8 = vsel %vm150_vm1, %v2123_v6, 0  ;;  %v204_v10 = vld [vmem:[#allocation5 + $0x8] sm:$0xff]  ;;  %v127_v12 = vld [vmem:[#allocation2 + $0x8] sm:$0xff]  ;;  %s2401_s19 = smov 120  }
  0x70   :  { %1954 = vmatpush3.bf16.xpose.msra.mxu1 %v231_v3  ;;  %1946 = vmatpush3.bf16.xpose.msra.mxu0 %v155_v4  ;;  %v234_v7 = vsel %vm150_vm1, %v2122_v5, 0  ;;  %v126_v11 = vld [vmem:[#allocation2] sm:$0xff]  ;;  %v2124_v13 = vld [vmem:[#allocation11] sm:$0xff]   ;;  %v205_v14 = vpack.c.bf16 %v204_v10, %v203_v9  ;;  %v2125_v17 = vld [vmem:[#allocation11 + $0x8] sm:$0xff]   ;;  %vm968_vm4 = vcmask 1043456   ;;  %s2404_s29 = smov 24  }
  0x71   :  { %1955 = vmatprep.subr.bf16.mxu1 %v2398_v0  ;;  %1947 = vmatprep.subr.bf16.mxu0 %v2398_v0  ;;  %v128_v15 = vpack.c.bf16 %v127_v12, %v126_v11  ;;  %v305_v16 = vsel %vm150_vm1, %v2124_v13, 0  ;;  %v308_v18 = vsel %vm150_vm1, %v2125_v17, 0  ;;  %v277_v19 = vld [vmem:[#allocation7] sm:$0xff]  ;;  %v278_v20 = vld [vmem:[#allocation7 + $0x8] sm:$0xff]  ;;  %v2663_v17 = vld [vmem:[#allocation8] sm:$0xff]  ;;  %s2406_s16 = smov [#allocation13]  }
  0x72   :  { %v279_v21 = vpack.c.bf16 %v278_v20, %v277_v19  ;;  %v1858_v22 = vld [vmem:[%s3026_s9] ss:$0 sm:$0xff]  ;;  %vm805_vm3 = vcmp.eq.f32.partialorder %v2663_v17, 0.0  ;;  %s1839_s1 = sshll.u32 %s2406_s16, 4  ;;  %s1840_s1 = int_to_ptr.vmem [resolvable:$true] %s1839_s1 }
  0x73   :  { %v1854_v23 = vld [vmem:[%s3025_s8] ss:$0 sm:$0xff]  ;;  %s2402_s8 = smov 104   ;;  %s2356_s5 = scalar_lea.vmem %s1840_s1, 256 }
  0x74   :  { %v2629_v44 = vld [vmem:[%s3027_s10] ss:$0 sm:$0xff]  ;;  %p2357_p6 = scmp.ne.s32.totalorder %s1840_s1, %s2356_s5  ;;  %p2361_p7 = scmp.lt.s32.totalorder %s1840_s1, %s1840_s1 }
  0x75   :  { %p2362_p8 = scmp.lt.s32.totalorder %s2356_s5, %s2356_s5 }
  0x77   :  { %p2363_p9 = por %p2362_p8, %p2361_p7 }
  0x78   :  { %1956 = vmatpush3.bf16.xpose.msra.mxu1 %v234_v7  ;;  %1948 = vmatpush3.bf16.xpose.msra.mxu0 %v158_v8 }
  0x79   :  { %1969 = vmatprep.subr.bf16.mxu1 %v2398_v0  ;;  %1961 = vmatprep.subr.bf16.mxu0 %v2398_v0  ;;  %p2364_p10 = pnand %p2363_p9, %p2357_p6 }
  0x7f   :  { %1958 = vmatmul.mubr.msk.bf16.vlgmr.msra.gmra.mrb[0].mxu1 %vm150_vm1, %v205_v14  ;;  %1950 = vmatmul.mubr.msk.bf16.vlgmr.msra.gmra.mrb[0].mxu0 %vm150_vm1, %v128_v15 }
  0x80   :  { %1971 = vmatprep.mubr.msk.bf16.mxu1 %vm2399_vm0, %v2398_v0  ;;  %1962 = vmatpush3.bf16.xpose.msra.mxu0 %v305_v16 }
  0x81   :  { %1965 = vmatprep.mubr.msk.bf16.mxu0 %vm2399_vm0, %v2398_v0  ;;  %1963 = vmatprep.subr.bf16.mxu0 %v2398_v0 }
  0x88   :  { %1964 = vmatpush3.bf16.xpose.msra.mxu0 %v308_v18 }
  0x89   :  { %1993 = vmatprep.subr.bf16.mxu0 %v2398_v0 }
  0x8f   :  { %1966 = vmatmul.mubr.msk.bf16.vlgmr.msra.gmra.mrb[4].mxu0 %vm150_vm1, %v279_v21 }
  0x90   :  { %1995 = vmatprep.mubr.msk.bf16.mxu0 %vm2399_vm0, %v2398_v0 }
 0x152   :  { %v270_v24 = vpop.f32.mrb[0].mxu1  ;;  %v194_v27 = vpop.f32.mrb[0].mxu0 }
 0x153   :  { %v271_v25 = vadd.f32 %v1858_v22, %v270_v24  ;;  %v1959_v26 = vpop.f32.mrb[1].mxu1  ;;  %v195_v28 = vadd.f32 %v1854_v23, %v194_v27  ;;  %v1951_v30 = vpop.f32.mrb[1].mxu0 }
 0x154   :  { %v273_v29 = vpop.f32.mrb[2].mxu1  ;;  %v197_v33 = vpop.f32.mrb[2].mxu0 }
 0x155   :  { %v274_v31 = vadd.f32 %v1858_v22, %v273_v29  ;;  %383 = vrot.lane.b32.xlu1 %v271_v25, %s2400_s17  ;;  %380 = vrot.lane.b32.xlu0 %v271_v25, %s2401_s19  ;;  %v1960_v32 = vpop.f32.mrb[3].mxu1  ;;  %v399_v34 = vpack.c.bf16 %v271_v25, %v271_v25  ;;  %v201_v35 = vmul.f32 0.35355338, %v195_v28  ;;  %v1952_v36 = vpop.f32.mrb[3].mxu0  ;;  %v198_v39 = vadd.f32 %v1854_v23, %v197_v33 }
 0x157   :  { %v440_v37 = vsel %vm435_vm2, %v399_v34, 0  ;;  %v403_v38 = vpack.c.bf16 %v274_v31, %v274_v31  ;;  %v371_v41 = vpack.c.bf16 %v201_v35, %v201_v35  ;;  %v202_v42 = vmul.f32 0.35355338, %v198_v39 }
 0x158   :  { %1970 = vmatpush3.bf16.xpose.msra.mxu1 %v440_v37 }
 0x159   :  { %355 = vrot.lane.b32.xlu1 %v201_v35, %s2400_s17  ;;  %352 = vrot.lane.b32.xlu0 %v201_v35, %s2401_s19  ;;  %v624_v40 = vsel %vm435_vm2, %v403_v38, 0  ;;  %v375_v43 = vpack.c.bf16 %v202_v42, %v202_v42 }
 0x15a   :  { %1994 = vmatpush3.bf16.xpose.msra.mxu0 %v624_v40  ;;  %1975 = vmatprep.subr.bf16.mxu1 %v2398_v0 }
 0x15b   :  { %2005 = vmatprep.subr.bf16.mxu0 %v2398_v0 }
 0x15d   :  { %358 = vrot.lane.b32.xlu1 %v201_v35, %s2402_s8  ;;  %386 = vrot.lane.b32.xlu0 %v271_v25, %s2402_s8 }
 0x15f   :  { %1972 = vmatmul.mubr.msk.bf16.vlgmr.msra.gmra.mrb[4].mxu1 %vm435_vm2, %v371_v41 }
 0x160   :  { %1977 = vmatprep.mubr.msk.bf16.mxu1 %vm2399_vm0, %v2398_v0 }
 0x161   :  { %390 = vrot.lane.b32.xlu0 %v274_v31, %s2401_s19  ;;  %362 = vrot.lane.b32.xlu1 %v202_v42, %s2401_s19 }
 0x162   :  { %1996 = vmatmul.mubr.msk.bf16.vlgmr.msra.gmra.mrb[8].mxu0 %vm435_vm2, %v375_v43  ;;  %v2631_v45 = vpop.f32.mrb[4].mxu0 }
 0x163   :  { %2007 = vmatprep.mubr.msk.bf16.mxu0 %vm2399_vm0, %v2398_v0  ;;  %v1967_v46 = vpop.f32.mrb[5].mxu0  ;;  %v2676_v28 = vadd.f32 %v2629_v44, %v2631_v45 }
 0x164   :  { %v347_v47 = vpop.f32.mrb[6].mxu0 }
 0x165   :  { %393 = vrot.lane.b32.xlu0 %v274_v31, %s2400_s17  ;;  %396 = vrot.lane.b32.xlu1 %v274_v31, %s2402_s8  ;;  %v2634_v48 = vadd.f32 %v2629_v44, %v347_v47  ;;  %v1968_v49 = vpop.f32.mrb[7].mxu0  ;;  %v427_v29 = vpack.c.bf16 %v2676_v28, %v2676_v28 }
 0x167   :  { %v1364_v30 = vsel %vm968_vm4, %v427_v29, 0 }
 0x169   :  { %365 = vrot.lane.b32.xlu0 %v202_v42, %s2400_s17  ;;  %368 = vrot.lane.b32.xlu1 %v202_v42, %s2402_s8 }
 0x1c7   :  { %v381_v50 = vpop.permute.xlu0 %380  ;;  %v384_v53 = vpop.permute.xlu1 %383 }
 0x1c8   :  { %v400_v51 = vpack.c.bf16 %v381_v50, %v381_v50  ;;  %v401_v55 = vpack.c.bf16 %v384_v53, %v384_v53 }
 0x1ca   :  { %v486_v52 = vsel %vm435_vm2, %v400_v51, 0  ;;  %v532_v59 = vsel %vm435_vm2, %v401_v55, 0 }
 0x1cb   :  { %v353_v54 = vpop.permute.xlu0 %352  ;;  %1976 = vmatpush3.bf16.xpose.msra.mxu1 %v486_v52  ;;  %v356_v58 = vpop.permute.xlu1 %355 }
 0x1cc   :  { %1981 = vmatprep.subr.bf16.mxu1 %v2398_v0  ;;  %v372_v56 = vpack.c.bf16 %v353_v54, %v353_v54  ;;  %v373_v1 = vpack.c.bf16 %v356_v58, %v356_v58 }
 0x1cf   :  { %v387_v57 = vpop.permute.xlu0 %386  ;;  %v359_v62 = vpop.permute.xlu1 %358 }
 0x1d0   :  { %v402_v61 = vpack.c.bf16 %v387_v57, %v387_v57  ;;  %v374_v8 = vpack.c.bf16 %v359_v62, %v359_v62 }
 0x1d2   :  { %1978 = vmatmul.mubr.msk.bf16.vlgmr.msra.gmra.mrb[8].mxu1 %vm435_vm2, %v372_v56  ;;  %v578_v3 = vsel %vm435_vm2, %v402_v61, 0 }
 0x1d3   :  { %v391_v60 = vpop.permute.xlu0 %390  ;;  %1982 = vmatpush3.bf16.xpose.msra.mxu1 %v532_v59  ;;  %1983 = vmatprep.mubr.msk.bf16.mxu1 %vm2399_vm0, %v2398_v0  ;;  %v363_v5 = vpop.permute.xlu1 %362 }
 0x1d4   :  { %1987 = vmatprep.subr.bf16.mxu1 %v2398_v0  ;;  %v404_v7 = vpack.c.bf16 %v391_v60, %v391_v60  ;;  %v376_v13 = vpack.c.bf16 %v363_v5, %v363_v5 }
 0x1d6   :  { %v670_v10 = vsel %vm435_vm2, %v404_v7, 0 }
 0x1d7   :  { %v394_v63 = vpop.permute.xlu0 %393  ;;  %v397_v11 = vpop.permute.xlu1 %396 }
 0x1d8   :  { %v405_v2 = vpack.c.bf16 %v394_v63, %v394_v63  ;;  %v406_v12 = vpack.c.bf16 %v397_v11, %v397_v11 }
 0x1da   :  { %v716_v4 = vsel %vm435_vm2, %v405_v2, 0  ;;  %1984 = vmatmul.mubr.msk.bf16.vlgmr.msra.gmra.mrb[12].mxu1 %vm435_vm2, %v373_v1  ;;  %v762_v14 = vsel %vm435_vm2, %v406_v12, 0  ;;  %v2403_v12 = vmov 0  }
 0x1db   :  { %1988 = vmatpush3.bf16.xpose.msra.mxu1 %v578_v3  ;;  %2006 = vmatpush3.bf16.xpose.msra.mxu0 %v716_v4  ;;  %v366_v6 = vpop.permute.xlu0 %365  ;;  %v369_v15 = vpop.permute.xlu1 %368 }
 0x1dc   :  { %1989 = vmatprep.mubr.msk.bf16.mxu1 %vm2399_vm0, %v2398_v0  ;;  %1999 = vmatprep.subr.bf16.mxu1 %v2398_v0  ;;  %v377_v9 = vpack.c.bf16 %v366_v6, %v366_v6  ;;  %v378_v16 = vpack.c.bf16 %v369_v15, %v369_v15 }
 0x1dd   :  { %2103 = vset.pattern.permute.xlu1 %v2403_v12  ;;  %2104 = vset.pattern.permute.xlu0 %v2403_v12 }
 0x1e2   :  { %1990 = vmatmul.mubr.msk.bf16.vlgmr.msra.gmra.mrb[16].mxu1 %vm435_vm2, %v374_v8  ;;  %2008 = vmatmul.mubr.msk.bf16.vlgmr.msra.gmra.mrb[12].mxu0 %vm435_vm2, %v377_v9 }
 0x1e3   :  { %2000 = vmatpush3.bf16.xpose.msra.mxu1 %v670_v10  ;;  %2001 = vmatprep.mubr.msk.bf16.mxu1 %vm2399_vm0, %v2398_v0 }
 0x1e4   :  { %2011 = vmatprep.subr.bf16.mxu1 %v2398_v0 }
 0x1ea   :  { %2002 = vmatmul.mubr.msk.bf16.vlgmr.msra.gmra.mrb[20].mxu1 %vm435_vm2, %v376_v13 }
 0x1eb   :  { %2012 = vmatpush3.bf16.xpose.msra.mxu1 %v762_v14  ;;  %2013 = vmatprep.mubr.msk.bf16.mxu1 %vm2399_vm0, %v2398_v0 }
 0x1ec   :  { %2027 = vmatprep.subr.bf16.mxu1 %v2398_v0 }
 0x1f2   :  { %2014 = vmatmul.mubr.msk.bf16.vlgmr.msra.gmra.mrb[24].mxu1 %vm435_vm2, %v378_v16 }
 0x1f3   :  { %2029 = vmatprep.mubr.msk.bf16.mxu1 %vm2399_vm0, %v2398_v0  ;;  %2028 = vmatpush3.bf16.msra.mxu1 %v1364_v30 }
 0x1f4   :  { %2033 = vmatprep.subr.bf16.mxu1 %v2398_v0 }
 0x232   :  { %v2666_v18 = vpop.f32.mrb[4].mxu1 }
 0x233   :  { %v1973_v19 = vpop.f32.mrb[5].mxu1  ;;  %v820_v20 = vsel %vm805_vm3, -1e+32, %v2666_v18 }
 0x234   :  { %v479_v21 = vpop.f32.mrb[6].mxu1  ;;  %v828_v22 = vsel %vm435_vm2, %v820_v20, -inf }
 0x235   :  { %v2672_v23 = vpop.f32.mrb[8].mxu0  ;;  %v1974_v24 = vpop.f32.mrb[7].mxu1  ;;  %829 = vmax.xlane.f32.xlu0 %v828_v22 }
 0x236   :  { %v1997_v25 = vpop.f32.mrb[9].mxu0  ;;  %v824_v37 = vsel %vm805_vm3, -1e+32, %v2672_v23 }
 0x237   :  { %v663_v26 = vpop.f32.mrb[10].mxu0  ;;  %v840_v38 = vsel %vm435_vm2, %v824_v37, -inf }
 0x238   :  { %v1998_v27 = vpop.f32.mrb[11].mxu0 }
 0x2a5   :  { %v2682_v31 = vpop.f32.mrb[8].mxu1 }
 0x2a6   :  { %v1979_v32 = vpop.f32.mrb[9].mxu1  ;;  %v821_v33 = vsel %vm805_vm3, -1e+32, %v2682_v31 }
 0x2a7   :  { %v525_v34 = vpop.f32.mrb[10].mxu1  ;;  %v831_v35 = vsel %vm435_vm2, %v821_v33, -inf }
 0x2a8   :  { %v1980_v36 = vpop.f32.mrb[11].mxu1  ;;  %832 = vmax.xlane.f32.xlu1 %v831_v35 }
 0x2ac   :  { %841 = vmax.xlane.f32.xlu1 %v840_v38 }
 0x2ad   :  { %v2692_v39 = vpop.f32.mrb[12].mxu1 }
 0x2ae   :  { %v1985_v40 = vpop.f32.mrb[13].mxu1  ;;  %v822_v41 = vsel %vm805_vm3, -1e+32, %v2692_v39 }
 0x2af   :  { %v571_v42 = vpop.f32.mrb[14].mxu1  ;;  %v834_v43 = vsel %vm435_vm2, %v822_v41, -inf }
 0x2b0   :  { %v1986_v44 = vpop.f32.mrb[15].mxu1  ;;  %835 = vmax.xlane.f32.xlu0 %v834_v43 }
 0x2b5   :  { %v2698_v45 = vpop.f32.mrb[16].mxu1  ;;  %v2700_v46 = vpop.f32.mrb[12].mxu0 }
 0x2b6   :  { %v1991_v47 = vpop.f32.mrb[17].mxu1  ;;  %v2009_v49 = vpop.f32.mrb[13].mxu0  ;;  %v823_v50 = vsel %vm805_vm3, -1e+32, %v2698_v45  ;;  %v826_v51 = vsel %vm805_vm3, -1e+32, %v2700_v46 }
 0x2b7   :  { %v617_v52 = vpop.f32.mrb[18].mxu1  ;;  %v755_v53 = vpop.f32.mrb[14].mxu0  ;;  %v837_v54 = vsel %vm435_vm2, %v823_v50, -inf  ;;  %v846_v55 = vsel %vm435_vm2, %v826_v51, -inf }
 0x2b8   :  { %v1992_v56 = vpop.f32.mrb[19].mxu1  ;;  %838 = vmax.xlane.f32.xlu0 %v837_v54  ;;  %847 = vmax.xlane.f32.xlu1 %v846_v55  ;;  %v2010_v57 = vpop.f32.mrb[15].mxu0 }
 0x2b9   :  { %v1880_v57 = vld [vmem:[%s3021_s4] ss:$0 sm:$0xff] }
 0x2bd   :  { %v2710_v58 = vpop.f32.mrb[20].mxu1 }
 0x2be   :  { %v2003_v59 = vpop.f32.mrb[21].mxu1  ;;  %v825_v60 = vsel %vm805_vm3, -1e+32, %v2710_v58 }
 0x2bf   :  { %v709_v61 = vpop.f32.mrb[22].mxu1  ;;  %v843_v62 = vsel %vm435_vm2, %v825_v60, -inf }
 0x2c0   :  { %844 = vmax.xlane.f32.xlu0 %v843_v62  ;;  %v2004_v63 = vpop.f32.mrb[23].mxu1 }
 0x2c2   :  { %v830_v1 = vpop.xlane.xlu0 %829 }
 0x2c3   :  { %v852_v2 = vsub.f32 %v820_v20, %v830_v1 }
 0x2c5   :  { %v860_v3 = vmul.f32 1.442695, %v852_v2  ;;  %v2716_v4 = vpop.f32.mrb[24].mxu1 }
 0x2c6   :  { %v2015_v5 = vpop.f32.mrb[25].mxu1  ;;  %v827_v6 = vsel %vm805_vm3, -1e+32, %v2716_v4 }
 0x2c7   :  { %2128 = vpow2.f32 %v860_v3  ;;  %v801_v7 = vpop.f32.mrb[26].mxu1  ;;  %v849_v8 = vsel %vm435_vm2, %v827_v6, -inf }
 0x2c8   :  { %850 = vmax.xlane.f32.xlu0 %v849_v8  ;;  %v2016_v9 = vpop.f32.mrb[27].mxu1 }
 0x2d1   :  { %v2722_v10 = vpop.eup %2128 }
 0x2d2   :  { %v876_v11 = vsel %vm435_vm2, %v2722_v10, 0.0 }
 0x2d3   :  { %877 = vadd.xlane.f32.xlu1 %v876_v11 }
 0x335   :  { %v833_v13 = vpop.xlane.xlu1 %832 }
 0x336   :  { %v853_v14 = vsub.f32 %v821_v33, %v833_v13 }
 0x338   :  { %v862_v15 = vmul.f32 1.442695, %v853_v14 }
 0x339   :  { %v842_v16 = vpop.xlane.xlu1 %841 }
 0x33a   :  { %2130 = vpow2.f32 %v862_v15  ;;  %v856_v19 = vsub.f32 %v824_v37, %v842_v16 }
 0x33c   :  { %v868_v22 = vmul.f32 1.442695, %v856_v19 }
 0x33d   :  { %v836_v20 = vpop.xlane.xlu0 %835 }
 0x33e   :  { %v854_v21 = vsub.f32 %v822_v41, %v836_v20 }
 0x340   :  { %v864_v24 = vmul.f32 1.442695, %v854_v21 }
 0x342   :  { %2132 = vpow2.f32 %v864_v24 }
 0x343   :  { %2134 = vpow2.f32 %v868_v22 }
 0x344   :  { %v2726_v25 = vpop.eup %2130 }
 0x345   :  { %v839_v26 = vpop.xlane.xlu0 %838  ;;  %v848_v27 = vpop.xlane.xlu1 %847  ;;  %v879_v29 = vsel %vm435_vm2, %v2726_v25, 0.0 }
 0x346   :  { %v855_v30 = vsub.f32 %v823_v50, %v839_v26  ;;  %v858_v32 = vsub.f32 %v826_v51, %v848_v27  ;;  %880 = vadd.xlane.f32.xlu0 %v879_v29 }
 0x348   :  { %v866_v33 = vmul.f32 1.442695, %v855_v30  ;;  %v872_v34 = vmul.f32 1.442695, %v858_v32 }
 0x34a   :  { %2136 = vpow2.f32 %v866_v33 }
 0x34b   :  { %2138 = vpow2.f32 %v872_v34 }
 0x34c   :  { %v2730_v35 = vpop.eup %2132 }
 0x34d   :  { %v845_v36 = vpop.xlane.xlu0 %844  ;;  %v882_v37 = vsel %vm435_vm2, %v2730_v35, 0.0  ;;  %v2734_v38 = vpop.eup %2134 }
 0x34e   :  { %v857_v40 = vsub.f32 %v825_v60, %v845_v36  ;;  %883 = vadd.xlane.f32.xlu1 %v882_v37  ;;  %v888_v42 = vsel %vm435_vm2, %v2734_v38, 0.0  ;;  %v807_v60 = vlaneseq }
 0x350   :  { %v870_v41 = vmul.f32 1.442695, %v857_v40  ;;  %v2757_v61 = vshrl.u32 %v807_v60, 7  ;;  %v812_v62 = vand.u32 127, %v807_v60 }
 0x352   :  { %2140 = vpow2.f32 %v870_v41  ;;  %889 = vadd.xlane.f32.xlu1 %v888_v42  ;;  %vm948_vm5 = vcmp.le.s32.totalorder %v2757_v61, %v812_v62  ;;  %v2766_v9 = vsub.s32 %v812_v62, %v2757_v61 }
 0x353   :  { %v1875_v1 = vsel %vm948_vm5, 1.0, %v2398_v0 }
 0x354   :  { %v2738_v43 = vpop.eup %2136  ;;  %v951_v2 = vpack.c.bf16 %v1875_v1, %v1875_v1 }
 0x355   :  { %v2740_v44 = vpop.eup %2138  ;;  %v851_v47 = vpop.xlane.xlu0 %850  ;;  %v885_v49 = vsel %vm435_vm2, %v2738_v43, 0.0 }
 0x356   :  { %v859_v50 = vsub.f32 %v827_v6, %v851_v47  ;;  %886 = vadd.xlane.f32.xlu0 %v885_v49  ;;  %v894_v51 = vsel %vm435_vm2, %v2740_v44, 0.0  ;;  %2083 = vmatprep.subr.msk.bf16.mxu0 %vm968_vm4, %v951_v2  ;;  %v970_v5 = vsel %vm968_vm4, %v951_v2, 0 }
 0x357   :  { %895 = vadd.xlane.f32.xlu1 %v894_v51  ;;  %2018 = vmatpush3.bf16.msra.mxu0 %v970_v5 }
 0x358   :  { %v874_v52 = vmul.f32 1.442695, %v859_v50  ;;  %2039 = vmatprep.subr.bf16.mxu0 %v2398_v0 }
 0x35a   :  { %2142 = vpow2.f32 %v874_v52 }
 0x35c   :  { %v2746_v53 = vpop.eup %2140 }
 0x35d   :  { %v891_v54 = vsel %vm435_vm2, %v2746_v53, 0.0 }
 0x35e   :  { %892 = vadd.xlane.f32.xlu0 %v891_v54 }
 0x360   :  { %v878_v59 = vpop.xlane.xlu1 %877 }
 0x361   :  { %2144 = vrcp.f32 %v878_v59 }
 0x364   :  { %v2750_v55 = vpop.eup %2142 }
 0x365   :  { %v897_v56 = vsel %vm435_vm2, %v2750_v55, 0.0 }
 0x366   :  { %898 = vadd.xlane.f32.xlu0 %v897_v56 }
 0x368   :  { %1166 = vperm.xlu1 %2103, %v1880_v57  }
 0x36b   :  { %v2145_v63 = vpop.eup %2144 }
 0x36c   :  { %v908_v3 = vmul.f32 %v2145_v63, %v878_v59 }
 0x36e   :  { %v916_v6 = vsub.f32 2.0, %v908_v3 }
 0x370   :  { %v924_v7 = vmul.f32 %v2145_v63, %v916_v6 }
 0x372   :  { %v932_v8 = vmul.f32 %v2722_v10, %v924_v7 }
 0x374   :  { %v940_v11 = vmul.f32 %v932_v8, %v2663_v17 }
 0x376   :  { %v1037_v12 = vsel %vm435_vm2, %v940_v11, 0.0 }
 0x38c   :  { %1038 = vadd.xlane.f32.xlu1 %v1037_v12 }
 0x3d3   :  { %v881_v13 = vpop.xlane.xlu0 %880 }
 0x3d4   :  { %2146 = vrcp.f32 %v881_v13 }
 0x3db   :  { %v884_v14 = vpop.xlane.xlu1 %883 }
 0x3dc   :  { %2148 = vrcp.f32 %v884_v14 }
 0x3de   :  { %v2147_v15 = vpop.eup %2146 }
 0x3df   :  { %v909_v16 = vmul.f32 %v2147_v15, %v881_v13  ;;  %v890_v19 = vpop.xlane.xlu1 %889 }
 0x3e0   :  { %2150 = vrcp.f32 %v890_v19 }
 0x3e1   :  { %v917_v20 = vsub.f32 2.0, %v909_v16 }
 0x3e3   :  { %v925_v21 = vmul.f32 %v2147_v15, %v917_v20  ;;  %v887_v22 = vpop.xlane.xlu0 %886 }
 0x3e4   :  { %2152 = vrcp.f32 %v887_v22  ;;  %v896_v10 = vpop.xlane.xlu1 %895 }
 0x3e5   :  { %2154 = vrcp.f32 %v896_v10  ;;  %v933_v24 = vmul.f32 %v2726_v25, %v925_v21 }
 0x3e6   :  { %v2149_v26 = vpop.eup %2148 }
 0x3e7   :  { %v910_v27 = vmul.f32 %v2149_v26, %v884_v14  ;;  %v941_v29 = vmul.f32 %v933_v24, %v2663_v17 }
 0x3e9   :  { %v918_v30 = vsub.f32 2.0, %v910_v27  ;;  %v1040_v32 = vsel %vm435_vm2, %v941_v29, 0.0  ;;  %v952_v33 = vpack.c.bf16 %v941_v29, %v940_v11  ;;  %v1883_v29 = vld [vmem:[%s3021_s4 + $0x3] ss:$0 sm:$0xff] }
 0x3ea   :  { %v2151_v34 = vpop.eup %2150  ;;  %1041 = vadd.xlane.f32.xlu0 %v1040_v32 }
 0x3eb   :  { %v912_v36 = vmul.f32 %v2151_v34, %v890_v19  ;;  %v893_v37 = vpop.xlane.xlu0 %892  ;;  %2019 = vmatprep.mubr.msk.bf16.mxu0 %vm435_vm2, %v952_v33  ;;  %v926_v40 = vmul.f32 %v2149_v26, %v918_v30  ;;  %v2806_v30 = vpop.permute.xlu1 %1166  ;;  %v815_v33 = vsub.s32 0, %v2766_v9 }
 0x3ec   :  { %2156 = vrcp.f32 %v893_v37 }
 0x3ed   :  { %v920_v41 = vsub.f32 2.0, %v912_v36  ;;  %v934_v54 = vmul.f32 %v2730_v35, %v926_v40 }
 0x3ee   :  { %v2153_v42 = vpop.eup %2152 }
 0x3ef   :  { %v2155_v47 = vpop.eup %2154  ;;  %v928_v25 = vmul.f32 %v2151_v34, %v920_v41  ;;  %v911_v49 = vmul.f32 %v2153_v42, %v887_v22  ;;  %v942_v2 = vmul.f32 %v934_v54, %v2663_v17 }
 0x3f0   :  { %v914_v50 = vmul.f32 %v2155_v47, %v896_v10 }
 0x3f1   :  { %v919_v51 = vsub.f32 2.0, %v911_v49  ;;  %v936_v52 = vmul.f32 %v2734_v38, %v928_v25  ;;  %v1043_v11 = vsel %vm435_vm2, %v942_v2, 0.0 }
 0x3f2   :  { %v922_v56 = vsub.f32 2.0, %v914_v50 }
 0x3f3   :  { %v927_v57 = vmul.f32 %v2153_v42, %v919_v51  ;;  %v899_v59 = vpop.xlane.xlu0 %898  ;;  %v944_v60 = vmul.f32 %v936_v52, %v2663_v17 }
 0x3f4   :  { %v930_v62 = vmul.f32 %v2155_v47, %v922_v56  ;;  %2158 = vrcp.f32 %v899_v59 }
 0x3f5   :  { %v935_v63 = vmul.f32 %v2738_v43, %v927_v57  ;;  %v1049_v1 = vsel %vm435_vm2, %v944_v60, 0.0 }
 0x3f6   :  { %v2157_v3 = vpop.eup %2156  ;;  %1050 = vadd.xlane.f32.xlu1 %v1049_v1  ;;  %v938_v5 = vmul.f32 %v2740_v44, %v930_v62 }
 0x3f7   :  { %v913_v38 = vmul.f32 %v2157_v3, %v893_v37  ;;  %v943_v35 = vmul.f32 %v935_v63, %v2663_v17  ;;  %v1874_v37 = vmin.u32 %v815_v33, %v2766_v9 }
 0x3f8   :  { %v946_v6 = vmul.f32 %v938_v5, %v2663_v17 }
 0x3f9   :  { %v921_v7 = vsub.f32 2.0, %v913_v38  ;;  %v953_v8 = vpack.c.bf16 %v943_v35, %v942_v2  ;;  %v1046_v44 = vsel %vm435_vm2, %v943_v35, 0.0  ;;  %v817_v41 = vcvt.s32.f32 %v1874_v37 }
 0x3fa   :  { %1044 = vadd.xlane.f32.xlu1 %v1043_v11  ;;  %v1055_v43 = vsel %vm435_vm2, %v946_v6, 0.0 }
 0x3fb   :  { %v929_v12 = vmul.f32 %v2157_v3, %v921_v7  ;;  %1056 = vadd.xlane.f32.xlu0 %v1055_v43  ;;  %2020 = vmatmul.mubr.msk.bf16.vlgmr.msra.gmra.mrb[16].mxu0 %vm435_vm2, %v953_v8 }
 0x3fd   :  { %v937_v13 = vmul.f32 %v2746_v53, %v929_v12  ;;  %v1882_v53 = vld [vmem:[%s3021_s4 + $0x2] ss:$0 sm:$0xff] }
 0x3fe   :  { %v2159_v14 = vpop.eup %2158 }
 0x3ff   :  { %v915_v15 = vmul.f32 %v2159_v14, %v899_v59  ;;  %1047 = vadd.xlane.f32.xlu0 %v1046_v44  ;;  %v945_v16 = vmul.f32 %v937_v13, %v2663_v17 }
 0x401   :  { %v923_v19 = vsub.f32 2.0, %v915_v15  ;;  %v954_v20 = vpack.c.bf16 %v945_v16, %v944_v60  ;;  %v1052_v21 = vsel %vm435_vm2, %v945_v16, 0.0 }
 0x403   :  { %v931_v22 = vmul.f32 %v2159_v14, %v923_v19  ;;  %1053 = vadd.xlane.f32.xlu0 %v1052_v21  ;;  %2023 = vmatprep.mubr.msk.bf16.mxu0 %vm435_vm2, %v954_v20 }
 0x405   :  { %v939_v10 = vmul.f32 %v2750_v55, %v931_v22  ;;  %v1881_v55 = vld [vmem:[%s3021_s4 + $0x1] ss:$0 sm:$0xff] }
 0x407   :  { %v947_v24 = vmul.f32 %v939_v10, %v2663_v17 }
 0x409   :  { %v1058_v26 = vsel %vm435_vm2, %v947_v24, 0.0  ;;  %v955_v27 = vpack.c.bf16 %v947_v24, %v946_v6 }
 0x40a   :  { %1059 = vadd.xlane.f32.xlu0 %v1058_v26 }
 0x40b   :  { %2024 = vmatmul.mubr.msk.bf16.gmra.mrb[20].mxu0 %vm435_vm2, %v955_v27  ;;  %1174 = vperm.xlu1 %2103, %v1882_v53  }
 0x40c   :  { %2041 = vmatprep.mubr.msk.bf16.mxu0 %vm2399_vm0, %v2398_v0 }
 0x40f   :  { %1178 = vperm.xlu1 %2103, %v1883_v29  }
 0x419   :  { %v1039_v32 = vpop.xlane.xlu1 %1038 }
 0x420   :  { %1170 = vperm.xlu0 %2104, %v1881_v55  }
 0x477   :  { %v1042_v34 = vpop.xlane.xlu0 %1041 }
 0x483   :  { %v1051_v36 = vpop.xlane.xlu1 %1050 }
 0x487   :  { %v1045_v42 = vpop.xlane.xlu1 %1044 }
 0x488   :  { %v1057_v40 = vpop.xlane.xlu0 %1056 }
 0x48c   :  { %v1048_v50 = vpop.xlane.xlu0 %1047 }
 0x490   :  { %v1054_v5 = vpop.xlane.xlu0 %1053 }
 0x497   :  { %v1060_v11 = vpop.xlane.xlu0 %1059 }
 0x4ce   :  { %v2021_v47 = vpop.f32.mrb[16].mxu0 }
 0x4cf   :  { %v1063_v25 = vsub.f32 %v1045_v42, %v2021_v47  ;;  %v1006_v49 = vpop.f32.mrb[17].mxu0  ;;  %v1171_v47 = vpop.permute.xlu0 %1170 }
 0x4d0   :  { %v1061_v51 = vsub.f32 %v1039_v32, %v1006_v49  ;;  %v2022_v52 = vpop.f32.mrb[18].mxu0 }
 0x4d1   :  { %v1071_v54 = vmul.f32 %v1063_v25, %v817_v41  ;;  %v1064_v56 = vsub.f32 %v1048_v50, %v2022_v52  ;;  %v1009_v57 = vpop.f32.mrb[19].mxu0 }
 0x4d2   :  { %v1069_v59 = vmul.f32 %v1061_v51, %v817_v41  ;;  %v1062_v60 = vsub.f32 %v1042_v34, %v1009_v57 }
 0x4d3   :  { %v1079_v62 = vmax.f32 %v1071_v54, 0.0  ;;  %v1072_v63 = vmul.f32 %v1064_v56, %v817_v41 }
 0x4d4   :  { %v1077_v1 = vmax.f32 %v1069_v59, 0.0  ;;  %v1070_v2 = vmul.f32 %v1062_v60, %v817_v41 }
 0x4d5   :  { %2160 = vrsqrt.f32 %v1079_v62  ;;  %v2810_v9 = vmax.f32 %v1072_v63, 0.0  ;;  %vm1101_vm6 = vcmp.eq.f32.partialorder %v1079_v62, inf  ;;  %v1104_v12 = vand.u32 2147483648, %v1079_v62 }
 0x4d6   :  { %2162 = vrsqrt.f32 %v1077_v1  ;;  %v1078_v3 = vmax.f32 %v1070_v2, 0.0  ;;  %vm1087_vm7 = vcmp.eq.f32.partialorder %v1077_v1, inf  ;;  %v1090_v16 = vand.u32 2147483648, %v1077_v1 }
 0x4d7   :  { %2164 = vrsqrt.f32 %v2810_v9  ;;  %vm1089_vm8 = vcmp.eq.f32.partialorder %v1077_v1, 0.0  ;;  %vm1103_vm10 = vcmp.eq.f32.partialorder %v1079_v62, 0.0  ;;  %vm1108_vm12 = vcmp.eq.f32.partialorder %v2810_v9, inf }
 0x4d8   :  { %2166 = vrsqrt.f32 %v1078_v3  ;;  %vm1094_vm9 = vcmp.eq.f32.partialorder %v1078_v3, inf  ;;  %v1097_v34 = vand.u32 2147483648, %v1078_v3  ;;  %vm1096_vm11 = vcmp.eq.f32.partialorder %v1078_v3, 0.0 }
 0x4d9   :  { %v1111_v51 = vand.u32 2147483648, %v2810_v9  ;;  %vm1110_vm13 = vcmp.eq.f32.partialorder %v2810_v9, 0.0 }
 0x4de   :  { %v2025_v38 = vpop.f32.mrb[20].mxu0 }
 0x4df   :  { %v2161_v35 = vpop.eup %2160  ;;  %v1067_v6 = vsub.f32 %v1057_v40, %v2025_v38  ;;  %v1022_v7 = vpop.f32.mrb[21].mxu0 }
 0x4e0   :  { %v2163_v8 = vpop.eup %2162  ;;  %v1100_v43 = vmul.f32 %v2161_v35, %v1079_v62  ;;  %v1065_v13 = vsub.f32 %v1051_v36, %v1022_v7  ;;  %v2026_v14 = vpop.f32.mrb[22].mxu0 }
 0x4e1   :  { %v2165_v44 = vpop.eup %2164  ;;  %v1086_v15 = vmul.f32 %v2163_v8, %v1077_v1  ;;  %v1075_v19 = vmul.f32 %v1067_v6, %v817_v41  ;;  %v1068_v20 = vsub.f32 %v1060_v11, %v2026_v14  ;;  %v1025_v21 = vpop.f32.mrb[23].mxu0 }
 0x4e2   :  { %v2167_v22 = vpop.eup %2166  ;;  %v1073_v10 = vmul.f32 %v1065_v13, %v817_v41  ;;  %v1066_v24 = vsub.f32 %v1054_v5, %v1025_v21  ;;  %v1102_v53 = vsel %vm1101_vm6, %v1079_v62, %v1100_v43  ;;  %v1175_v36 = vpop.permute.xlu1 %1174  ;;  %v1107_v37 = vmul.f32 %v2165_v44, %v2810_v9 }
 0x4e3   :  { %v2814_v26 = vmax.f32 %v1075_v19, 0.0  ;;  %v1076_v27 = vmul.f32 %v1068_v20, %v817_v41  ;;  %v1093_v29 = vmul.f32 %v2167_v22, %v1078_v3  ;;  %v1088_v55 = vsel %vm1087_vm7, %v1077_v1, %v1086_v15 }
 0x4e4   :  { %v2817_v32 = vmax.f32 %v1073_v10, 0.0  ;;  %v1074_v33 = vmul.f32 %v1066_v24, %v817_v41  ;;  %v1091_v25 = vsel %vm1089_vm8, %v1090_v16, %v1088_v55  ;;  %v1105_v49 = vsel %vm1103_vm10, %v1104_v12, %v1102_v53 }
 0x4e5   :  { %2168 = vrsqrt.f32 %v2814_v26  ;;  %v2821_v40 = vmax.f32 %v1076_v27, 0.0  ;;  %v1095_v41 = vsel %vm1094_vm9, %v1078_v3, %v1093_v29  ;;  %v1181_v54 = vmul.f32 %v2806_v30, %v1091_v25 }
 0x4e6   :  { %2170 = vrsqrt.f32 %v2817_v32  ;;  %v1082_v42 = vmax.f32 %v1074_v33, 0.0  ;;  %v1098_v50 = vsel %vm1096_vm11, %v1097_v34, %v1095_v41  ;;  %v1183_v56 = vmul.f32 %v1175_v36, %v1105_v49  ;;  %v1179_v59 = vpop.permute.xlu1 %1178 }
 0x4e7   :  { %2172 = vrsqrt.f32 %v2821_v40  ;;  %v1182_v52 = vmul.f32 %v1171_v47, %v1098_v50  ;;  %v1109_v57 = vsel %vm1108_vm12, %v2810_v9, %v1107_v37  ;;  %v1189_v62 = vmax.f32 %v1181_v54, -11.512925 }
 0x4e8   :  { %2174 = vrsqrt.f32 %v1082_v42  ;;  %v1191_v63 = vmax.f32 %v1183_v56, -11.512925  ;;  %v1112_v1 = vsel %vm1110_vm13, %v1111_v51, %v1109_v57  ;;  %vm1129_vm14 = vcmp.eq.f32.partialorder %v2814_v26, inf }
 0x4e9   :  { %v1190_v60 = vmax.f32 %v1182_v52, -11.512925  ;;  %v1184_v2 = vmul.f32 %v1179_v59, %v1112_v1  ;;  %v1197_v5 = vmul.f32 1.442695, %v1189_v62  ;;  %v1132_v35 = vand.u32 2147483648, %v2814_v26 }
 0x4ea   :  { %v1201_v38 = vmul.f32 1.442695, %v1191_v63  ;;  %vm1115_vm15 = vcmp.eq.f32.partialorder %v2817_v32, inf  ;;  %v1118_v8 = vand.u32 2147483648, %v2817_v32  ;;  %vm1136_vm5 = vcmp.eq.f32.partialorder %v2821_v40, inf }
 0x4eb   :  { %v1199_v3 = vmul.f32 1.442695, %v1190_v60  ;;  %v1192_v6 = vmax.f32 %v1184_v2, -11.512925  ;;  %v1139_v43 = vand.u32 2147483648, %v2821_v40  ;;  %vm1122_vm6 = vcmp.eq.f32.partialorder %v1082_v42, inf }
 0x4ec   :  { %v1125_v44 = vand.u32 2147483648, %v1082_v42  ;;  %vm1131_vm7 = vcmp.eq.f32.partialorder %v2814_v26, 0.0  ;;  %vm1117_vm8 = vcmp.eq.f32.partialorder %v2817_v32, 0.0  ;;  %vm1138_vm9 = vcmp.eq.f32.partialorder %v2821_v40, 0.0 }
 0x4ed   :  { %2176 = vpow2.f32 %v1199_v3  ;;  %v1203_v12 = vmul.f32 1.442695, %v1192_v6  ;;  %vm1124_vm10 = vcmp.eq.f32.partialorder %v1082_v42, 0.0 }
 0x4ee   :  { %2178 = vpow2.f32 %v1197_v5 }
 0x4ef   :  { %v2169_v7 = vpop.eup %2168  ;;  %2180 = vpow2.f32 %v1201_v38 }
 0x4f0   :  { %v2171_v9 = vpop.eup %2170  ;;  %v1128_v11 = vmul.f32 %v2169_v7, %v2814_v26  ;;  %2182 = vpow2.f32 %v1203_v12 }
 0x4f1   :  { %v2173_v13 = vpop.eup %2172  ;;  %v1114_v14 = vmul.f32 %v2171_v9, %v2817_v32 }
 0x4f2   :  { %v2175_v15 = vpop.eup %2174  ;;  %v1135_v16 = vmul.f32 %v2173_v13, %v2821_v40  ;;  %v1130_v19 = vsel %vm1129_vm14, %v2814_v26, %v1128_v11 }
 0x4f3   :  { %v1121_v20 = vmul.f32 %v2175_v15, %v1082_v42  ;;  %v1116_v21 = vsel %vm1115_vm15, %v2817_v32, %v1114_v14  ;;  %v1133_v22 = vsel %vm1131_vm7, %v1132_v35, %v1130_v19 }
 0x4f4   :  { %v1119_v10 = vsel %vm1117_vm8, %v1118_v8, %v1116_v21  ;;  %v1187_v24 = vmul.f32 %v1175_v36, %v1133_v22  ;;  %v1137_v53 = vsel %vm1136_vm5, %v2821_v40, %v1135_v16 }
 0x4f5   :  { %v1123_v27 = vsel %vm1122_vm6, %v1082_v42, %v1121_v20  ;;  %v1185_v26 = vmul.f32 %v2806_v30, %v1119_v10  ;;  %v1140_v29 = vsel %vm1138_vm9, %v1139_v43, %v1137_v53 }
 0x4f6   :  { %v1126_v55 = vsel %vm1124_vm10, %v1125_v44, %v1123_v27  ;;  %v1195_v33 = vmax.f32 %v1187_v24, -11.512925  ;;  %v1188_v34 = vmul.f32 %v1179_v59, %v1140_v29 }
 0x4f7   :  { %v1186_v37 = vmul.f32 %v1171_v47, %v1126_v55  ;;  %v1193_v32 = vmax.f32 %v1185_v26, -11.512925  ;;  %v2177_v36 = vpop.eup %2176 }
 0x4f8   :  { %v1209_v25 = vmul.f32 1.442695, %v1195_v33  ;;  %v1196_v49 = vmax.f32 %v1188_v34, -11.512925  ;;  %v2179_v51 = vpop.eup %2178  ;;  %v1214_v52 = vmul.f32 %v2177_v36, %v2682_v31 }
 0x4f9   :  { %v1194_v41 = vmax.f32 %v1186_v37, -11.512925  ;;  %v1205_v50 = vmul.f32 1.442695, %v1193_v32  ;;  %v2181_v54 = vpop.eup %2180  ;;  %v1213_v30 = vmul.f32 %v2179_v51, %v2666_v18 }
 0x4fa   :  { %2184 = vpow2.f32 %v1209_v25  ;;  %v1211_v40 = vmul.f32 1.442695, %v1196_v49  ;;  %v2183_v56 = vpop.eup %2182  ;;  %v1222_v47 = vsel %vm805_vm3, -1e+32, %v1214_v52  ;;  %v1215_v57 = vmul.f32 %v2181_v54, %v2692_v39 }
 0x4fb   :  { %v1207_v42 = vmul.f32 1.442695, %v1194_v41  ;;  %2186 = vpow2.f32 %v1205_v50  ;;  %v1221_v59 = vsel %vm805_vm3, -1e+32, %v1213_v30  ;;  %v1232_v31 = vsel %vm435_vm2, %v1222_v47, -inf }
 0x4fc   :  { %2188 = vpow2.f32 %v1211_v40  ;;  %v1216_v60 = vmul.f32 %v2183_v56, %v2698_v45  ;;  %v1229_v62 = vsel %vm435_vm2, %v1221_v59, -inf  ;;  %1233 = vmax.xlane.f32.xlu0 %v1232_v31  ;;  %v1223_v18 = vsel %vm805_vm3, -1e+32, %v1215_v57 }
 0x4fd   :  { %2190 = vpow2.f32 %v1207_v42  ;;  %1230 = vmax.xlane.f32.xlu1 %v1229_v62  ;;  %v1235_v63 = vsel %vm435_vm2, %v1223_v18, -inf }
 0x4fe   :  { %v1224_v39 = vsel %vm805_vm3, -1e+32, %v1216_v60 }
 0x4ff   :  { %v1238_v45 = vsel %vm435_vm2, %v1224_v39, -inf }
 0x501   :  { %1236 = vmax.xlane.f32.xlu1 %v1235_v63 }
 0x504   :  { %v2185_v1 = vpop.eup %2184 }
 0x505   :  { %v2187_v2 = vpop.eup %2186  ;;  %v1219_v3 = vmul.f32 %v2185_v1, %v2700_v46  ;;  %1239 = vmax.xlane.f32.xlu1 %v1238_v45 }
 0x506   :  { %v2189_v5 = vpop.eup %2188  ;;  %v1217_v38 = vmul.f32 %v2187_v2, %v2672_v23 }
 0x507   :  { %v2191_v35 = vpop.eup %2190  ;;  %v1220_v6 = vmul.f32 %v2189_v5, %v2716_v4  ;;  %v1227_v23 = vsel %vm805_vm3, -1e+32, %v1219_v3 }
 0x508   :  { %v1225_v7 = vsel %vm805_vm3, -1e+32, %v1217_v38  ;;  %v1218_v8 = vmul.f32 %v2191_v35, %v2710_v58  ;;  %v1247_v43 = vsel %vm435_vm2, %v1227_v23, -inf }
 0x509   :  { %v1241_v9 = vsel %vm435_vm2, %v1225_v7, -inf  ;;  %v1228_v4 = vsel %vm805_vm3, -1e+32, %v1220_v6 }
 0x50a   :  { %1242 = vmax.xlane.f32.xlu1 %v1241_v9  ;;  %v1226_v46 = vsel %vm805_vm3, -1e+32, %v1218_v8  ;;  %v1250_v58 = vsel %vm435_vm2, %v1228_v4, -inf  ;;  %vm1341_vm3 = vcmp.eq.s32.totalorder %v2757_v61, 0 }
 0x50b   :  { %v1244_v11 = vsel %vm435_vm2, %v1226_v46, -inf }
 0x50e   :  { %1245 = vmax.xlane.f32.xlu1 %v1244_v11 }
 0x512   :  { %1248 = vmax.xlane.f32.xlu1 %v1247_v43 }
 0x516   :  { %1251 = vmax.xlane.f32.xlu1 %v1250_v58 }
 0x589   :  { %v1234_v14 = vpop.xlane.xlu0 %1233 }
 0x58a   :  { %v1231_v12 = vpop.xlane.xlu1 %1230  ;;  %v1254_v19 = vsub.f32 %v1222_v47, %v1234_v14 }
 0x58b   :  { %v1253_v13 = vsub.f32 %v1221_v59, %v1231_v12 }
 0x58c   :  { %v1263_v10 = vmul.f32 1.442695, %v1254_v19 }
 0x58d   :  { %v1261_v16 = vmul.f32 1.442695, %v1253_v13 }
 0x58e   :  { %v1237_v44 = vpop.xlane.xlu1 %1236 }
 0x58f   :  { %v1255_v15 = vsub.f32 %v1223_v18, %v1237_v44 }
 0x591   :  { %v1265_v20 = vmul.f32 1.442695, %v1255_v15 }
 0x592   :  { %v1240_v21 = vpop.xlane.xlu1 %1239 }
 0x593   :  { %2192 = vpow2.f32 %v1265_v20  ;;  %v1256_v22 = vsub.f32 %v1224_v39, %v1240_v21 }
 0x594   :  { %2194 = vpow2.f32 %v1261_v16 }
 0x595   :  { %v1267_v24 = vmul.f32 1.442695, %v1256_v22 }
 0x597   :  { %v1243_v53 = vpop.xlane.xlu1 %1242  ;;  %2196 = vpow2.f32 %v1267_v24 }
 0x598   :  { %2198 = vpow2.f32 %v1263_v10  ;;  %v1257_v56 = vsub.f32 %v1225_v7, %v1243_v53  ;;  %v431_v10 = vpack.c.bf16 %v2634_v48, %v2634_v48 }
 0x59a   :  { %v1269_v57 = vmul.f32 1.442695, %v1257_v56 }
 0x59b   :  { %v1246_v17 = vpop.xlane.xlu1 %1245 }
 0x59c   :  { %v1258_v34 = vsub.f32 %v1226_v46, %v1246_v17  ;;  %v1548_v17 = vsel %vm968_vm4, %v431_v10, 0 }
 0x59d   :  { %v2886_v27 = vpop.eup %2192 }
 0x59e   :  { %v1283_v26 = vsel %vm435_vm2, %v2886_v27, 0.0  ;;  %v2195_v55 = vpop.eup %2194  ;;  %v1271_v41 = vmul.f32 1.442695, %v1258_v34 }
 0x59f   :  { %v1249_v29 = vpop.xlane.xlu1 %1248  ;;  %1284 = vadd.xlane.f32.xlu1 %v1283_v26  ;;  %v1277_v32 = vsel %vm435_vm2, %v2195_v55, 0.0 }
 0x5a0   :  { %v1259_v30 = vsub.f32 %v1227_v23, %v1249_v29 }
 0x5a1   :  { %v2890_v33 = vpop.eup %2196 }
 0x5a2   :  { %v1286_v37 = vsel %vm435_vm2, %v2890_v33, 0.0  ;;  %v2199_v49 = vpop.eup %2198  ;;  %v1273_v47 = vmul.f32 1.442695, %v1259_v30 }
 0x5a3   :  { %v1252_v25 = vpop.xlane.xlu1 %1251  ;;  %1287 = vadd.xlane.f32.xlu0 %v1286_v37  ;;  %1278 = vadd.xlane.f32.xlu1 %v1277_v32  ;;  %v1280_v51 = vsel %vm435_vm2, %v2199_v49, 0.0 }
 0x5a4   :  { %v1260_v36 = vsub.f32 %v1228_v4, %v1252_v25 }
 0x5a6   :  { %v1275_v50 = vmul.f32 1.442695, %v1260_v36 }
 0x5a7   :  { %1281 = vadd.xlane.f32.xlu0 %v1280_v51 }
 0x5a8   :  { %2200 = vpow2.f32 %v1275_v50 }
 0x5a9   :  { %2202 = vpow2.f32 %v1271_v41 }
 0x5aa   :  { %2204 = vpow2.f32 %v1273_v47 }
 0x5ab   :  { %2206 = vpow2.f32 %v1269_v57 }
 0x5b2   :  { %v2896_v52 = vpop.eup %2200 }
 0x5b3   :  { %v1298_v40 = vsel %vm435_vm2, %v2896_v52, 0.0  ;;  %v2900_v54 = vpop.eup %2202 }
 0x5b4   :  { %1299 = vadd.xlane.f32.xlu0 %v1298_v40  ;;  %408 = vrot.lane.b32.xlu1 %v2676_v28, %s2401_s19  ;;  %v1292_v42 = vsel %vm435_vm2, %v2900_v54, 0.0  ;;  %v2910_v59 = vpop.eup %2204 }
 0x5b5   :  { %v1295_v31 = vsel %vm435_vm2, %v2910_v59, 0.0  ;;  %v2914_v60 = vpop.eup %2206 }
 0x5b6   :  { %v1289_v62 = vsel %vm435_vm2, %v2914_v60, 0.0 }
 0x5b8   :  { %1293 = vadd.xlane.f32.xlu0 %v1292_v42 }
 0x5ce   :  { %411 = vrot.lane.b32.xlu0 %v2676_v28, %s2400_s17 }
 0x5d2   :  { %421 = vrot.lane.b32.xlu0 %v2634_v48, %s2400_s17 }
 0x5d8   :  { %1296 = vadd.xlane.f32.xlu1 %v1295_v31 }
 0x5dc   :  { %1290 = vadd.xlane.f32.xlu1 %v1289_v62 }
 0x5ed   :  { %414 = vrot.lane.b32.xlu1 %v2676_v28, %s2402_s8 }
 0x5f1   :  { %418 = vrot.lane.b32.xlu1 %v2634_v48, %s2401_s19 }
 0x5f5   :  { %424 = vrot.lane.b32.xlu1 %v2634_v48, %s2402_s8 }
 0x62c   :  { %v1285_v18 = vpop.xlane.xlu1 %1284 }
 0x62d   :  { %2208 = vrcp.f32 %v1285_v18 }
 0x630   :  { %v1288_v63 = vpop.xlane.xlu0 %1287  ;;  %v1279_v39 = vpop.xlane.xlu1 %1278 }
 0x631   :  { %2210 = vrcp.f32 %v1279_v39 }
 0x634   :  { %v1282_v1 = vpop.xlane.xlu0 %1281  ;;  %v409_v9 = vpop.permute.xlu1 %408 }
 0x635   :  { %2212 = vrcp.f32 %v1282_v1  ;;  %v428_v4 = vpack.c.bf16 %v409_v9, %v409_v9 }
 0x636   :  { %2214 = vrcp.f32 %v1288_v63 }
 0x637   :  { %v2209_v2 = vpop.eup %2208  ;;  %v1410_v15 = vsel %vm968_vm4, %v428_v4, 0 }
 0x638   :  { %v1311_v3 = vmul.f32 %v2209_v2, %v1285_v18 }
 0x63a   :  { %v1319_v38 = vsub.f32 2.0, %v1311_v3 }
 0x63b   :  { %v2211_v5 = vpop.eup %2210 }
 0x63c   :  { %v1309_v45 = vmul.f32 %v2211_v5, %v1279_v39  ;;  %v1327_v46 = vmul.f32 %v2209_v2, %v1319_v38 }
 0x63e   :  { %v1317_v28 = vsub.f32 2.0, %v1309_v45  ;;  %v1335_v13 = vmul.f32 %v2886_v27, %v1327_v46 }
 0x63f   :  { %v2213_v35 = vpop.eup %2212 }
 0x640   :  { %v1310_v6 = vmul.f32 %v2213_v35, %v1282_v1  ;;  %v1325_v8 = vmul.f32 %v2211_v5, %v1317_v28  ;;  %v1346_v20 = vsel %vm1341_vm3, 0.0, %v1335_v13  ;;  %v2215_v48 = vpop.eup %2214 }
 0x641   :  { %v1300_v7 = vpop.xlane.xlu0 %1299  ;;  %v1354_v24 = vpack.c.bf16 %v1346_v20, %v1346_v20  ;;  %v1312_v27 = vmul.f32 %v2215_v48, %v1288_v63 }
 0x642   :  { %v1318_v11 = vsub.f32 2.0, %v1310_v6  ;;  %v1333_v23 = vmul.f32 %v2195_v55, %v1325_v8 }
 0x643   :  { %v1320_v26 = vsub.f32 2.0, %v1312_v27 }
 0x644   :  { %v1326_v43 = vmul.f32 %v2213_v35, %v1318_v11  ;;  %v1344_v12 = vsel %vm1341_vm3, 0.0, %v1333_v23 }
 0x645   :  { %v1294_v58 = vpop.xlane.xlu0 %1293  ;;  %v1352_v14 = vpack.c.bf16 %v1344_v12, %v1344_v12  ;;  %v1328_v34 = vmul.f32 %v2215_v48, %v1320_v26 }
 0x646   :  { %v1334_v44 = vmul.f32 %v2199_v49, %v1326_v43  ;;  %2216 = vrcp.f32 %v1294_v58 }
 0x647   :  { %2030 = vmatmul.mubr.msk.bf16.vlgmr.msra.gmra.mrb[28].mxu1 %vm435_vm2, %v1352_v14  ;;  %2218 = vrcp.f32 %v1300_v7  ;;  %v1336_v25 = vmul.f32 %v2890_v33, %v1328_v34 }
 0x648   :  { %2034 = vmatpush3.bf16.msra.mxu1 %v1410_v15  ;;  %2035 = vmatprep.mubr.msk.bf16.mxu1 %vm2399_vm0, %v2398_v0  ;;  %v1345_v21 = vsel %vm1341_vm3, 0.0, %v1334_v44 }
 0x649   :  { %v412_v16 = vpop.permute.xlu0 %411  ;;  %2045 = vmatprep.subr.bf16.mxu1 %v2398_v0  ;;  %v1353_v53 = vpack.c.bf16 %v1345_v21, %v1345_v21  ;;  %v1347_v51 = vsel %vm1341_vm3, 0.0, %v1336_v25 }
 0x64a   :  { %v429_v19 = vpack.c.bf16 %v412_v16, %v412_v16  ;;  %v1355_v57 = vpack.c.bf16 %v1347_v51, %v1347_v51 }
 0x64c   :  { %v1456_v22 = vsel %vm968_vm4, %v429_v19, 0 }
 0x64d   :  { %2040 = vmatpush3.bf16.msra.mxu0 %v1456_v22  ;;  %v422_v35 = vpop.permute.xlu0 %421 }
 0x64e   :  { %2051 = vmatprep.subr.bf16.mxu0 %v2398_v0  ;;  %v433_v46 = vpack.c.bf16 %v422_v35, %v422_v35 }
 0x64f   :  { %2036 = vmatmul.mubr.msk.bf16.vlgmr.msra.gmra.mrb[32].mxu1 %vm435_vm2, %v1353_v53 }
 0x650   :  { %2042 = vmatmul.mubr.msk.bf16.vlgmr.msra.gmra.mrb[24].mxu0 %vm435_vm2, %v1354_v24  ;;  %2047 = vmatprep.mubr.msk.bf16.mxu1 %vm2399_vm0, %v2398_v0  ;;  %v2217_v29 = vpop.eup %2216 }
 0x651   :  { %2052 = vmatpush3.bf16.msra.mxu0 %v1548_v17  ;;  %2053 = vmatprep.mubr.msk.bf16.mxu0 %vm2399_vm0, %v2398_v0  ;;  %v1314_v37 = vmul.f32 %v2217_v29, %v1294_v58  ;;  %v2219_v36 = vpop.eup %2218  ;;  %v2126_v17 = vld [vmem:[%s3028_s11] sm:$0xff]  }
 0x652   :  { %2063 = vmatprep.subr.bf16.mxu0 %v2398_v0  ;;  %v1316_v40 = vmul.f32 %v2219_v36, %v1300_v7  ;;  %v1786_v26 = vsel %vm150_vm1, %v2126_v17, 0 }
 0x653   :  { %v1322_v49 = vsub.f32 2.0, %v1314_v37 }
 0x654   :  { %v1324_v62 = vsub.f32 2.0, %v1316_v40 }
 0x655   :  { %v1330_v42 = vmul.f32 %v2217_v29, %v1322_v49 }
 0x656   :  { %v1332_v3 = vmul.f32 %v2219_v36, %v1324_v62 }
 0x657   :  { %v1338_v33 = vmul.f32 %v2900_v54, %v1330_v42 }
 0x658   :  { %v1340_v7 = vmul.f32 %v2896_v52, %v1332_v3 }
 0x659   :  { %v1349_v5 = vsel %vm1341_vm3, 0.0, %v1338_v33 }
 0x65a   :  { %v1357_v6 = vpack.c.bf16 %v1349_v5, %v1349_v5  ;;  %v1351_v4 = vsel %vm1341_vm3, 0.0, %v1340_v7 }
 0x65b   :  { %v1359_v58 = vpack.c.bf16 %v1351_v4, %v1351_v4 }
 0x665   :  { %v1297_v55 = vpop.xlane.xlu1 %1296 }
 0x666   :  { %2220 = vrcp.f32 %v1297_v55 }
 0x669   :  { %v1291_v32 = vpop.xlane.xlu1 %1290 }
 0x66a   :  { %2222 = vrcp.f32 %v1291_v32 }
 0x66d   :  { %v415_v41 = vpop.permute.xlu1 %414 }
 0x66e   :  { %v430_v50 = vpack.c.bf16 %v415_v41, %v415_v41 }
 0x670   :  { %v2221_v30 = vpop.eup %2220  ;;  %v1502_v56 = vsel %vm968_vm4, %v430_v50, 0 }
 0x671   :  { %2046 = vmatpush3.bf16.msra.mxu1 %v1502_v56  ;;  %v419_v47 = vpop.permute.xlu1 %418  ;;  %v1315_v18 = vmul.f32 %v2221_v30, %v1297_v55  ;;  %v2127_v55 = vld [vmem:[%s3028_s11 + $0x8] sm:$0xff]   ;;  %s2405_s11 = smov 16  }
 0x672   :  { %v432_v31 = vpack.c.bf16 %v419_v47, %v419_v47  ;;  %2057 = vmatprep.subr.bf16.mxu1 %v2398_v0  ;;  %v1789_v37 = vsel %vm150_vm1, %v2127_v55, 0 }
 0x673   :  { %v1323_v45 = vsub.f32 2.0, %v1315_v18 }
 0x674   :  { %v2223_v63 = vpop.eup %2222  ;;  %v1594_v39 = vsel %vm968_vm4, %v432_v31, 0  ;;  %2048 = vmatmul.mubr.msk.bf16.vlgmr.msra.gmra.mrb[36].mxu1 %vm435_vm2, %v1355_v57 }
 0x675   :  { %v1313_v1 = vmul.f32 %v2223_v63, %v1291_v32  ;;  %2058 = vmatpush3.bf16.msra.mxu1 %v1594_v39  ;;  %v425_v2 = vpop.permute.xlu1 %424  ;;  %2059 = vmatprep.mubr.msk.bf16.mxu1 %vm2399_vm0, %v2398_v0  ;;  %v1331_v8 = vmul.f32 %v2221_v30, %v1323_v45 }
 0x676   :  { %2069 = vmatprep.subr.bf16.mxu1 %v2398_v0  ;;  %v434_v38 = vpack.c.bf16 %v425_v2, %v425_v2 }
 0x677   :  { %v1321_v54 = vsub.f32 2.0, %v1313_v1  ;;  %v1339_v52 = vmul.f32 %v2910_v59, %v1331_v8 }
 0x678   :  { %v1686_v11 = vsel %vm968_vm4, %v434_v38, 0 }
 0x679   :  { %v1329_v28 = vmul.f32 %v2223_v63, %v1321_v54  ;;  %v1350_v12 = vsel %vm1341_vm3, 0.0, %v1339_v52 }
 0x67a   :  { %v1358_v13 = vpack.c.bf16 %v1350_v12, %v1350_v12 }
 0x67b   :  { %v1337_v9 = vmul.f32 %v2914_v60, %v1329_v28  ;;  %v1640_v60 = vsel %vm968_vm4, %v433_v46, 0  ;;  %vm1743_vm4 = vcmask 195584  }
 0x67c   :  { %2060 = vmatmul.mubr.msk.bf16.vlgmr.msra.gmra.mrb[40].mxu1 %vm435_vm2, %v1357_v6 }
 0x67d   :  { %v1348_v23 = vsel %vm1341_vm3, 0.0, %v1337_v9  ;;  %2070 = vmatpush3.bf16.msra.mxu1 %v1686_v11  ;;  %2071 = vmatprep.mubr.msk.bf16.mxu1 %vm2399_vm0, %v2398_v0  ;;  %v1892_v11 = vld [vmem:[%s3029_s12] ss:$0 sm:$0xff] }
 0x67e   :  { %v1356_v43 = vpack.c.bf16 %v1348_v23, %v1348_v23 }
 0x680   :  { %2054 = vmatmul.mubr.msk.bf16.vlgmr.msra.gmra.mrb[28].mxu0 %vm435_vm2, %v1356_v43 }
 0x681   :  { %2064 = vmatpush3.bf16.msra.mxu0 %v1640_v60  ;;  %2065 = vmatprep.mubr.msk.bf16.mxu0 %vm2399_vm0, %v2398_v0 }
 0x682   :  { %2075 = vmatprep.subr.bf16.mxu0 %v2398_v0 }
 0x684   :  { %2072 = vmatmul.mubr.msk.bf16.vlgmr.msra.gmra.mrb[44].mxu1 %vm435_vm2, %v1359_v58 }
 0x688   :  { %2066 = vmatmul.mubr.msk.bf16.vlgmr.msra.gmra.mrb[32].mxu0 %vm435_vm2, %v1358_v13 }
 0x689   :  { %2079 = vmatprep.mubr.msk.bf16.mxu0 %vm2399_vm0, %v2398_v0  ;;  %vm1741_vm0 = vcmask 130048  }
 0x68a   :  { %2076 = vmatpush3.bf16.xpose.msra.mxu0 %v1786_v26 }
 0x68b   :  { %2077 = vmatprep.subr.bf16.mxu0 %v2398_v0 }
 0x692   :  { %2078 = vmatpush3.bf16.xpose.msra.mxu0 %v1789_v37 }
 0x71a   :  { %v1400_v59 = vpop.f32.mrb[28].mxu1 }
 0x71b   :  { %v2031_v14 = vpop.f32.mrb[29].mxu1 }
 0x71c   :  { %v1403_v44 = vpop.f32.mrb[30].mxu1 }
 0x71d   :  { %v2032_v15 = vpop.f32.mrb[31].mxu1 }
 0x722   :  { %v1446_v19 = vpop.f32.mrb[32].mxu1 }
 0x723   :  { %v1492_v16 = vpop.f32.mrb[24].mxu0  ;;  %v2037_v21 = vpop.f32.mrb[33].mxu1 }
 0x724   :  { %v2043_v20 = vpop.f32.mrb[25].mxu0  ;;  %v1449_v10 = vpop.f32.mrb[34].mxu1 }
 0x725   :  { %v1495_v22 = vpop.f32.mrb[26].mxu0  ;;  %v2038_v24 = vpop.f32.mrb[35].mxu1 }
 0x726   :  { %v2044_v61 = vpop.f32.mrb[27].mxu0 }
 0x747   :  { %v1538_v53 = vpop.f32.mrb[36].mxu1 }
 0x748   :  { %v2049_v48 = vpop.f32.mrb[37].mxu1 }
 0x749   :  { %v1541_v27 = vpop.f32.mrb[38].mxu1 }
 0x74a   :  { %v2050_v29 = vpop.f32.mrb[39].mxu1 }
 0x74f   :  { %v1630_v34 = vpop.f32.mrb[40].mxu1 }
 0x750   :  { %v2105_v32 = vpack.i.bf16 %v1630_v34, %v1446_v19  ;;  %v2061_v25 = vpop.f32.mrb[41].mxu1 }
 0x751   :  { %v1633_v49 = vpop.f32.mrb[42].mxu1 }
 0x752   :  { %2106 = vrot.lane.b32.xlu0 %v2105_v32, %s2391_s21  ;;  %v2062_v36 = vpop.f32.mrb[43].mxu1 }
 0x753   :  { %v1584_v41 = vpop.f32.mrb[28].mxu0 }
 0x754   :  { %v2055_v50 = vpop.f32.mrb[29].mxu0 }
 0x755   :  { %v1587_v51 = vpop.f32.mrb[30].mxu0 }
 0x756   :  { %v2056_v40 = vpop.f32.mrb[31].mxu0 }
 0x757   :  { %v1722_v42 = vpop.f32.mrb[44].mxu1 }
 0x758   :  { %v2115_v0 = vpack.i.bf16 %v1722_v42, %v1538_v53  ;;  %v2073_v30 = vpop.f32.mrb[45].mxu1 }
 0x759   :  { %v1725_v56 = vpop.f32.mrb[46].mxu1 }
 0x75a   :  { %2116 = vrot.lane.b32.xlu0 %v2115_v0, %s2404_s29  ;;  %v2074_v47 = vpop.f32.mrb[47].mxu1 }
 0x75b   :  { %v1676_v57 = vpop.f32.mrb[32].mxu0 }
 0x75c   :  { %v2110_v31 = vpack.i.bf16 %v1676_v57, %v1492_v16  ;;  %v2067_v62 = vpop.f32.mrb[33].mxu0 }
 0x75d   :  { %v1679_v33 = vpop.f32.mrb[34].mxu0 }
 0x75e   :  { %2111 = vrot.lane.b32.xlu1 %v2110_v31, %s2405_s11  ;;  %v2068_v18 = vpop.f32.mrb[35].mxu0 }
 0x7c4   :  { %v2107_v63 = vpop.permute.xlu0 %2106 }
 0x7c5   :  { %v2109_v39 = vunpack.i.h.bf16 %v2107_v63  ;;  %v2108_v1 = vunpack.i.l.bf16 %v2107_v63 }
 0x7c7   :  { %v1757_v54 = vsel %vm435_vm2, %v1584_v41, %v2109_v39  ;;  %v1740_v38 = vsel %vm435_vm2, %v1400_v59, %v2108_v1 }
 0x7cc   :  { %v2117_v2 = vpop.permute.xlu0 %2116 }
 0x7cd   :  { %v2119_v35 = vunpack.i.h.bf16 %v2117_v2  ;;  %v2118_v28 = vunpack.i.l.bf16 %v2117_v2 }
 0x7d0   :  { %v2112_v3 = vpop.permute.xlu1 %2111 }
 0x7d1   :  { %v2114_v5 = vunpack.i.h.bf16 %v2112_v3  ;;  %v2113_v45 = vunpack.i.l.bf16 %v2112_v3 }
 0x7d3   :  { %v1758_v6 = vsel %vm1741_vm0, %v1757_v54, %v2114_v5  ;;  %v1742_v7 = vsel %vm1741_vm0, %v1740_v38, %v2113_v45 }
 0x7d4   :  { %v1759_v8 = vsel %vm1743_vm4, %v1758_v6, %v2119_v35  ;;  %v1744_v9 = vsel %vm1743_vm4, %v1742_v7, %v2118_v28 }
 0x7d5   :  { %v1760_v46 = vpack.c.bf16 %v1759_v8, %v1744_v9 }
 0x7d7   :  { %2080 = vmatmul.mubr.msk.bf16.vlgmr.msra.gmra.mrb[36].mxu0 %vm150_vm1, %v1760_v46 }
 0x8aa   :  { %v1825_v23 = vpop.f32.mrb[36].mxu0 }
 0x8ab   :  { %v1826_v43 = vadd.f32 %v1892_v11, %v1825_v23  ;;  %v2081_v4 = vpop.f32.mrb[37].mxu0 }
 0x8ac   :  { %v1828_v52 = vpop.f32.mrb[38].mxu0 }
 0x8ad   :  { %1832 = vst.msk [vmem:[#allocation13] sm:$0xff] %vm150_vm1, %v1826_v43  ;;  %v1829_v60 = vadd.f32 %v1892_v11, %v1828_v52  ;;  %v2082_v58 = vpop.f32.mrb[39].mxu0 }
 0x8af   :  { %1833 = vst.msk [vmem:[#allocation13 + $0x8] sm:$0xff] %vm150_vm1, %v1829_v60 }
 0x8b0   :  { %2367 = shalt.err (!%p2364_p10)
}
 0x8b1   :  { %s2368_s2 = scalar_lea.hbm %s3030_s13, 256 }
 0x8b2   :  { %p2369_p11 = scmp.ne.s32.totalorder %s3030_s13, %s2368_s2  ;;  %p2372_p12 = scmp.lt.u32.totalorder %s2368_s2, %s3030_s13 }
 0x8b4   :  { %p2374_p13 = pnand %p2372_p12, %p2369_p11 }
 0x8b6   :  { %2377 = shalt.err (!%p2374_p13)
}
 0x8b7   :  { %1845 = dma.vmem_to_hbm [thread:$0]  %s1840_s1, 256, %s3030_s13, [#allocation4], %s2390_s20, %s2390_s20, %s2391_s21  }
 0x8b8   :  { %2386 = dma.done.wait [#allocation4], 256  }
 0x8b9   :  { %2387 = vsyncadd [#allocation4], 4294967040 }
 0x8ba   :  { %1849 = vsyncpa [#allocation3], 1 }
 0x8bb   :  { %1850 = vsyncpa [#allocation6], 1 }
 0x8bc   :  { %1851 = vsyncpa [#allocation9], 1 }
 0x8bd   :  { %1852 = vsyncpa [#allocation12], 1 }
 0x8be   :  { %1853 = vsyncpa [#allocation4], 1 }

</bundles_post_ra>
